<compile_context>
chip_gen: v5e
topology: v5e:2x2
jax: 0.10.0
libtpu: 0.0.40
codegen_flags: <defaults>
</compile_context>

<pallas_src>
import functools

import jax
import jax.numpy as jnp
from jax.experimental import pallas as pl
from jax.experimental.pallas import tpu as pltpu

FEAT_PAD = 8          # 3-D coords augmented/zero-padded to 8 feature columns
PAD_DIST = 1e30       # "never the nearest neighbour" distance for padded scan rows
INT32_MAX = 2147483647


def _normal_loss_kernel(sv_ref, tvt_ref, dist_ref, idx_ref, mind_scr, argm_scr):
    j = pl.program_id(1)
    tn = sv_ref.shape[0]

    @pl.when(j == 0)
    def _():
        mind_scr[...] = jnp.full_like(mind_scr, jnp.inf)
        argm_scr[...] = jnp.zeros_like(argm_scr)

    # (tn, 8) x (8, tm) -> (tn, tm); augmented features make this the true
    # squared distance ||s - t||^2 (||t||^2 is folded in via feature slot 4).
    d = jnp.dot(sv_ref[...], tvt_ref[...], preferred_element_type=jnp.float32)

    # Per-template (lane) min over this scan tile.
    blk_min = jnp.min(d, axis=0, keepdims=True)                      # (1, tm) f32

    # First-index argmin in int32: local row iota, INT_MAX filler, reduce, then
    # add the tile offset to the (1, tm) result only (no full-tile add / cast).
    rows = jax.lax.broadcasted_iota(jnp.int32, d.shape, 0)           # (tn, tm) i32
    blk_arg = jnp.min(jnp.where(d == blk_min, rows, INT32_MAX),
                      axis=0, keepdims=True) + j * tn                # (1, tm) i32

    # Cross-tile running min; strict '<' keeps the earlier (smaller-index) tile
    # on exact ties, consistent with first-index argmin semantics.
    better = blk_min < mind_scr[...]
    argm_scr[...] = jnp.where(better, blk_arg, argm_scr[...])
    mind_scr[...] = jnp.where(better, blk_min, mind_scr[...])

    @pl.when(j == pl.num_programs(1) - 1)
    def _():
        # Clamp tiny negative cancellation residue of the expanded form to 0.
        dist_ref[...] = jnp.maximum(mind_scr[...], 0.0)
        idx_ref[...] = argm_scr[...]


def _round_up(x, m):
    return ((x + m - 1) // m) * m


@functools.partial(jax.jit, static_argnames=("normal_threshold_angle", "tm", "tn"))
def normal_loss(scan_vertices, template_vertices, scan_normals, template_normals,
                *, normal_threshold_angle, tm=512, tn=1024):
    """Pallas implementation of NormalLoss.forward.

    scan_vertices: (N, 3), template_vertices: (M, 3),
    scan_normals:  (N, 3), template_normals:  (M, 3).  Returns a scalar f32.
    Arbitrary N, M are supported (inputs are padded internally); tiles are
    clamped so small inputs are not over-padded.
    """
    n = scan_vertices.shape[0]
    m = template_vertices.shape[0]
    assert tm % 128 == 0 and tn % 128 == 0, "tiles must be multiples of 128"

    # Clamp tiles for small problems (stays a multiple of 128).
    tm_eff = min(tm, _round_up(m, 128))
    tn_eff = min(tn, _round_up(n, 128))

    m_pad = _round_up(m, tm_eff)
    n_pad = _round_up(n, tn_eff)

    sv32 = scan_vertices.astype(jnp.float32)
    tv32 = template_vertices.astype(jnp.float32)

    # Scan operand: rows = scan points, augmented so the MXU contraction yields
    # the full squared distance.  Padded rows get a huge ||s||^2 and a zero
    # "+||t||^2" flag so they can never win the argmin.
    s_sq = jnp.sum(sv32 * sv32, axis=1)
    sv_aug = jnp.zeros((n_pad, FEAT_PAD), jnp.float32)
    sv_aug = sv_aug.at[:n, :3].set(sv32)
    sv_aug = sv_aug.at[:, 3].set(
        jnp.full((n_pad,), PAD_DIST, jnp.float32).at[:n].set(s_sq))
    sv_aug = sv_aug.at[:n, 4].set(1.0)

    # Template operand stored transposed (feature-major) so template points sit
    # on the 128-lane axis: rows are [-2x, -2y, -2z, 1, ||t||^2, 0, 0, 0].
    tvt_aug = jnp.zeros((FEAT_PAD, m_pad), jnp.float32)
    tvt_aug = tvt_aug.at[:3, :m].set(-2.0 * tv32.T)
    tvt_aug = tvt_aug.at[3, :m].set(1.0)
    tvt_aug = tvt_aug.at[4, :m].set(jnp.sum(tv32 * tv32, axis=1))

    grid = (m_pad // tm_eff, n_pad // tn_eff)

    dist, idx = pl.pallas_call(
        _normal_loss_kernel,
        out_shape=(jax.ShapeDtypeStruct((1, m_pad), jnp.float32),
                   jax.ShapeDtypeStruct((1, m_pad), jnp.int32)),
        grid_spec=pltpu.PrefetchScalarGridSpec(
            num_scalar_prefetch=0,
            grid=grid,
            in_specs=[
                pl.BlockSpec((tn_eff, FEAT_PAD), lambda i, j: (j, 0)),  # scan (aug)
                pl.BlockSpec((FEAT_PAD, tm_eff), lambda i, j: (0, i)),  # template^T
            ],
            out_specs=[
                pl.BlockSpec((1, tm_eff), lambda i, j: (0, i)),  # min sq. distance
                pl.BlockSpec((1, tm_eff), lambda i, j: (0, i)),  # argmin scan index
            ],
            scratch_shapes=[
                pltpu.VMEM((1, tm_eff), jnp.float32),  # running min distance
                pltpu.VMEM((1, tm_eff), jnp.int32),    # running argmin index
            ],
        ),
        compiler_params=pltpu.CompilerParams(
            dimension_semantics=("parallel", "arbitrary"),
            vmem_limit_bytes=32 * 1024 * 1024),
    )(sv_aug, tvt_aug)

    dist = dist[0, :m]
    idx = idx[0, :m]

    # Glue: O(M) gather of the matched scan normal + angle threshold + masked sum.
    nn_normals = jnp.take(scan_normals.astype(jnp.float32), idx, axis=0)
    dot = jnp.sum(nn_normals * template_normals.astype(jnp.float32), axis=1)
    angle_deg = jnp.degrees(jnp.arccos(jnp.clip(dot, -1.0, 1.0)))
    mask = angle_deg < normal_threshold_angle
    return jnp.sum(jnp.where(mask, dist, 0.0))


def _reference_loss(scan_v, templ_v, scan_n, templ_n, thr):
    d = jnp.sum((templ_v[:, None, :] - scan_v[None, :, :]) ** 2, axis=-1)  # (M, N)
    idx = jnp.argmin(d, axis=1)
    dmin = jnp.min(d, axis=1)
    dot = jnp.sum(scan_n[idx] * templ_n, axis=1)
    ang = jnp.degrees(jnp.arccos(jnp.clip(dot, -1.0, 1.0)))
    return jnp.sum(jnp.where(ang < thr, dmin, 0.0))


if __name__ == "__main__":
    key = jax.random.PRNGKey(0)
    k1, k2, k3, k4 = jax.random.split(key, 4)

    N, M = 512, 256  # scan / template point counts
    threshold_deg = 30.0

    scan_v = jax.random.normal(k1, (N, 3), jnp.float32)
    templ_v = jax.random.normal(k2, (M, 3), jnp.float32)

    def _unit(x):
        return x / jnp.linalg.norm(x, axis=1, keepdims=True)

    scan_n = _unit(jax.random.normal(k3, (N, 3), jnp.float32))
    templ_n = _unit(jax.random.normal(k4, (M, 3), jnp.float32))

    # Case 1: default (large, auto-clamped) tiles — single-tile grid.
    loss = jax.block_until_ready(
        normal_loss(scan_v, templ_v, scan_n, templ_n,
                    normal_threshold_angle=threshold_deg))
    ref = jax.block_until_ready(
        _reference_loss(scan_v, templ_v, scan_n, templ_n, threshold_deg))
    assert jnp.allclose(loss, ref, rtol=1e-4, atol=1e-3), (loss, ref)

    # Case 2: small explicit tiles + non-multiple template count (M=250) so the
    # multi-tile scan reduction, cross-tile argmin carry and padding paths run.
    loss2 = jax.block_until_ready(
        normal_loss(scan_v, templ_v[:250], scan_n, templ_n[:250],
                    normal_threshold_angle=threshold_deg, tm=128, tn=256))
    ref2 = jax.block_until_ready(
        _reference_loss(scan_v, templ_v[:250], scan_n, templ_n[:250], threshold_deg))
    assert jnp.allclose(loss2, ref2, rtol=1e-4, atol=1e-3), (loss2, ref2)

    print("KERNEL_OK")
</pallas_src>

<mosaic_0001>
module attributes {stable_mosaic.version = 11 : i64} {
  func.func @_normal_loss_kernel(%arg0: i32, %arg1: i32, %arg2: memref<512x8xf32, #tpu.memory_space<vmem>>, %arg3: memref<8x256xf32, #tpu.memory_space<vmem>>, %arg4: memref<1x256xf32, #tpu.memory_space<vmem>>, %arg5: memref<1x256xi32, #tpu.memory_space<vmem>>, %arg6: memref<1x256xf32, #tpu.memory_space<vmem>>, %arg7: memref<1x256xi32, #tpu.memory_space<vmem>>) attributes {dimension_semantics = [#tpu.dimension_semantics<parallel>, #tpu.dimension_semantics<arbitrary>], iteration_bounds = array<i64: 1, 1>, scalar_prefetch = 0 : i64, scratch_operands = 2 : i64, tpu.core_type = #tpu.core_type<tc>, window_params = [{transform_indices = @transform_0, window_bounds = array<i64: 512, 8>}, {transform_indices = @transform_1, window_bounds = array<i64: 8, 256>}, {transform_indices = @transform_2, window_bounds = array<i64: 1, 256>}, {transform_indices = @transform_3, window_bounds = array<i64: 1, 256>}]} {
    %c0_i32 = arith.constant 0 : i32
    %0 = arith.cmpi eq, %arg1, %c0_i32 : i32
    %1 = arith.extui %0 : i1 to i32
    %c0_i32_0 = arith.constant 0 : i32
    %2 = arith.cmpi ne, %1, %c0_i32_0 : i32
    scf.if %2 {
      %cst_18 = arith.constant 0x7F800000 : f32
      %29 = vector.broadcast %cst_18 : f32 to vector<1x256xf32>
      %c0_19 = arith.constant 0 : index
      %c0_20 = arith.constant 0 : index
      %30 = vector.load %arg6[%c0_19, %c0_20] : memref<1x256xf32, #tpu.memory_space<vmem>>, vector<1x256xf32>
      tpu.vector_store %arg6[%c0_19, %c0_20], %29 {strides = array<i32>} : memref<1x256xf32, #tpu.memory_space<vmem>>, vector<1x256xf32>,
      %c0_i32_21 = arith.constant 0 : i32
      %31 = vector.broadcast %c0_i32_21 : i32 to vector<1x256xi32>
      %c0_22 = arith.constant 0 : index
      %c0_23 = arith.constant 0 : index
      %32 = vector.load %arg7[%c0_22, %c0_23] : memref<1x256xi32, #tpu.memory_space<vmem>>, vector<1x256xi32>
      tpu.vector_store %arg7[%c0_22, %c0_23], %31 {strides = array<i32>} : memref<1x256xi32, #tpu.memory_space<vmem>>, vector<1x256xi32>,
    } else {
    }
    %c0 = arith.constant 0 : index
    %c0_1 = arith.constant 0 : index
    %3 = vector.load %arg2[%c0, %c0_1] : memref<512x8xf32, #tpu.memory_space<vmem>>, vector<512x8xf32>
    %c0_2 = arith.constant 0 : index
    %c0_3 = arith.constant 0 : index
    %4 = vector.load %arg3[%c0_2, %c0_3] : memref<8x256xf32, #tpu.memory_space<vmem>>, vector<8x256xf32>
    %cst = arith.constant dense<0.000000e+00> : vector<512x256xf32>
    %5 = tpu.matmul %3, %4, %cst {dimension_numbers = #tpu.dot_dimension_numbers<[1], [0], [0], [1], [0, 0, 1, 1], [], []>} : vector<512x8xf32>, vector<8x256xf32>, vector<512x256xf32> -> vector<512x256xf32>
    %cst_4 = arith.constant dense<0x7F800000> : vector<256xf32>
    %6 = vector.multi_reduction <minimumf>, %5, %cst_4 [0] : vector<512x256xf32> to vector<256xf32>
    %7 = vector.shape_cast %6 : vector<256xf32> to vector<1x256xf32>
    %8 = tpu.iota {dimensions = array<i32: 0>} : vector<512x256xi32>
    %9 = vector.broadcast %7 : vector<1x256xf32> to vector<512x256xf32>
    %10 = arith.cmpf oeq, %5, %9 : vector<512x256xf32>
    %c2147483647_i32 = arith.constant 2147483647 : i32
    %11 = vector.broadcast %c2147483647_i32 : i32 to vector<512x256xi32>
    %12 = arith.select %10, %8, %11 : vector<512x256xi1>, vector<512x256xi32>
    %cst_5 = arith.constant dense<2147483647> : vector<256xi32>
    %13 = vector.multi_reduction <minsi>, %12, %cst_5 [0] : vector<512x256xi32> to vector<256xi32>
    %14 = vector.shape_cast %13 : vector<256xi32> to vector<1x256xi32>
    %c512_i32 = arith.constant 512 : i32
    %15 = arith.muli %arg1, %c512_i32 : i32
    %16 = vector.broadcast %15 : i32 to vector<1x256xi32>
    %17 = arith.addi %14, %16 : vector<1x256xi32>
    %c0_6 = arith.constant 0 : index
    %c0_7 = arith.constant 0 : index
    %18 = vector.load %arg6[%c0_6, %c0_7] : memref<1x256xf32, #tpu.memory_space<vmem>>, vector<1x256xf32>
    %19 = arith.cmpf olt, %7, %18 : vector<1x256xf32>
    %c0_8 = arith.constant 0 : index
    %c0_9 = arith.constant 0 : index
    %20 = vector.load %arg7[%c0_8, %c0_9] : memref<1x256xi32, #tpu.memory_space<vmem>>, vector<1x256xi32>
    %21 = arith.select %19, %17, %20 : vector<1x256xi1>, vector<1x256xi32>
    %c0_10 = arith.constant 0 : index
    %c0_11 = arith.constant 0 : index
    %22 = vector.load %arg7[%c0_10, %c0_11] : memref<1x256xi32, #tpu.memory_space<vmem>>, vector<1x256xi32>
    tpu.vector_store %arg7[%c0_10, %c0_11], %21 {strides = array<i32>} : memref<1x256xi32, #tpu.memory_space<vmem>>, vector<1x256xi32>,
    %c0_12 = arith.constant 0 : index
    %c0_13 = arith.constant 0 : index
    %23 = vector.load %arg6[%c0_12, %c0_13] : memref<1x256xf32, #tpu.memory_space<vmem>>, vector<1x256xf32>
    %24 = arith.select %19, %7, %23 : vector<1x256xi1>, vector<1x256xf32>
    %c0_14 = arith.constant 0 : index
    %c0_15 = arith.constant 0 : index
    %25 = vector.load %arg6[%c0_14, %c0_15] : memref<1x256xf32, #tpu.memory_space<vmem>>, vector<1x256xf32>
    tpu.vector_store %arg6[%c0_14, %c0_15], %24 {strides = array<i32>} : memref<1x256xf32, #tpu.memory_space<vmem>>, vector<1x256xf32>,
    %c0_i32_16 = arith.constant 0 : i32
    %26 = arith.cmpi eq, %arg1, %c0_i32_16 : i32
    %27 = arith.extui %26 : i1 to i32
    %c0_i32_17 = arith.constant 0 : i32
    %28 = arith.cmpi ne, %27, %c0_i32_17 : i32
    scf.if %28 {
      %c0_18 = arith.constant 0 : index
      %c0_19 = arith.constant 0 : index
      %29 = vector.load %arg6[%c0_18, %c0_19] : memref<1x256xf32, #tpu.memory_space<vmem>>, vector<1x256xf32>
      %cst_20 = arith.constant 0.000000e+00 : f32
      %30 = vector.broadcast %cst_20 : f32 to vector<1x256xf32>
      %31 = arith.maximumf %29, %30 : vector<1x256xf32>
      %c0_21 = arith.constant 0 : index
      %c0_22 = arith.constant 0 : index
      %32 = vector.load %arg4[%c0_21, %c0_22] : memref<1x256xf32, #tpu.memory_space<vmem>>, vector<1x256xf32>
      tpu.vector_store %arg4[%c0_21, %c0_22], %31 {strides = array<i32>} : memref<1x256xf32, #tpu.memory_space<vmem>>, vector<1x256xf32>,
      %c0_23 = arith.constant 0 : index
      %c0_24 = arith.constant 0 : index
      %33 = vector.load %arg7[%c0_23, %c0_24] : memref<1x256xi32, #tpu.memory_space<vmem>>, vector<1x256xi32>
      %c0_25 = arith.constant 0 : index
      %c0_26 = arith.constant 0 : index
      %34 = vector.load %arg5[%c0_25, %c0_26] : memref<1x256xi32, #tpu.memory_space<vmem>>, vector<1x256xi32>
      tpu.vector_store %arg5[%c0_25, %c0_26], %33 {strides = array<i32>} : memref<1x256xi32, #tpu.memory_space<vmem>>, vector<1x256xi32>,
    } else {
    }
    return
  }
  func.func @transform_0(%arg0: i32, %arg1: i32) -> (i32, i32) {
    %c0_i32 = arith.constant 0 : i32
    %c0_i32_0 = arith.constant 0 : i32
    return %arg1, %c0_i32 : i32, i32
  }
  func.func @transform_1(%arg0: i32, %arg1: i32) -> (i32, i32) {
    %c0_i32 = arith.constant 0 : i32
    %c0_i32_0 = arith.constant 0 : i32
    return %c0_i32, %arg0 : i32, i32
  }
  func.func @transform_2(%arg0: i32, %arg1: i32) -> (i32, i32) {
    %c0_i32 = arith.constant 0 : i32
    %c0_i32_0 = arith.constant 0 : i32
    return %c0_i32, %arg0 : i32, i32
  }
  func.func @transform_3(%arg0: i32, %arg1: i32) -> (i32, i32) {
    %c0_i32 = arith.constant 0 : i32
    %c0_i32_0 = arith.constant 0 : i32
    return %c0_i32, %arg0 : i32, i32
  }
}

</mosaic_0001>

<bundles_post_ra>
// kernel: normal_loss.1
= control target key start
LH: loop header
LB: loop body
LE: loop exit
PB: predicated region body
PF: predicated region fallthrough
CT: control target
= control target key end

     0   :  { %vm89_vm0 = vcmask 64512   ;;  %s3199_s1 = inlined_call_operand.vmem [shape: f32[8,256], index: 1, kind: input, shape index: {}]   ;;  %s3200_s0 = inlined_call_operand.vmem [shape: f32[512,8], index: 0, kind: input, shape index: {}]   ;;  %s3201_s2 = inlined_call_operand.vmem [shape: f32[1,256], index: 2, kind: output, shape index: {0}]   ;;  %s3202_s3 = inlined_call_operand.vmem [shape: s32[1,256], index: 3, kind: output, shape index: {1}]  }
   0x1   :  { %v87_v0 = vld [vmem:[%s3199_s1] sm:$0xff]  ;;  %v88_v1 = vld [vmem:[%s3199_s1 + $0x8] sm:$0xff]  ;;  %v25_v6 = vld [vmem:[%s3200_s0 + $0x10] sm:$0xff] }
   0x2   :  { %v23_v2 = vld [vmem:[%s3200_s0] sm:$0xff]  ;;  %297 = vmatpush.msra.mxu0 %v87_v0  ;;  %506 = vmatpush.msra.mxu1 %v88_v1  ;;  %v24_v4 = vld [vmem:[%s3200_s0 + $0x8] sm:$0xff]  ;;  %v57_v7 = vld [vmem:[%s3200_s0 + $0x110] sm:$0xff] }
   0x3   :  { %1484 = vmatmul.msk.f32.vlgmr.msra.gmra.mxu0 %vm89_vm0, %v23_v2  ;;  %1548 = vmatmul.msk.f32.vlgmr.msra.gmra.mxu1 %vm89_vm0, %v23_v2  ;;  %v55_v3 = vld [vmem:[%s3200_s0 + $0x100] sm:$0xff]  ;;  %v56_v5 = vld [vmem:[%s3200_s0 + $0x108] sm:$0xff]  ;;  %v26_v8 = vld [vmem:[%s3200_s0 + $0x18] sm:$0xff] }
   0x4   :  { %1612 = vmatpush.msra.mxu2 %v87_v0  ;;  %1613 = vmatpush.msra.mxu3 %v88_v1  ;;  %v58_v9 = vld [vmem:[%s3200_s0 + $0x118] sm:$0xff]  ;;  %v27_v10 = vld [vmem:[%s3200_s0 + $0x20] sm:$0xff]  ;;  %v28_v12 = vld [vmem:[%s3200_s0 + $0x28] sm:$0xff] }
   0x5   :  { %1516 = vmatmul.msk.f32.vlgmr.msra.gmra.mxu2 %vm89_vm0, %v55_v3  ;;  %1580 = vmatmul.msk.f32.vlgmr.msra.gmra.mxu3 %vm89_vm0, %v55_v3  ;;  %v59_v11 = vld [vmem:[%s3200_s0 + $0x120] sm:$0xff]  ;;  %v60_v13 = vld [vmem:[%s3200_s0 + $0x128] sm:$0xff]  ;;  %v29_v14 = vld [vmem:[%s3200_s0 + $0x30] sm:$0xff] }
   0x6   :  { %v61_v15 = vld [vmem:[%s3200_s0 + $0x130] sm:$0xff]  ;;  %v30_v16 = vld [vmem:[%s3200_s0 + $0x38] sm:$0xff]  ;;  %v31_v18 = vld [vmem:[%s3200_s0 + $0x40] sm:$0xff] }
   0x7   :  { %v62_v17 = vld [vmem:[%s3200_s0 + $0x138] sm:$0xff]  ;;  %v63_v19 = vld [vmem:[%s3200_s0 + $0x140] sm:$0xff]  ;;  %v32_v20 = vld [vmem:[%s3200_s0 + $0x48] sm:$0xff] }
   0x8   :  { %v64_v21 = vld [vmem:[%s3200_s0 + $0x148] sm:$0xff]  ;;  %v33_v22 = vld [vmem:[%s3200_s0 + $0x50] sm:$0xff]  ;;  %v34_v24 = vld [vmem:[%s3200_s0 + $0x58] sm:$0xff] }
   0x9   :  { %v65_v23 = vld [vmem:[%s3200_s0 + $0x150] sm:$0xff]  ;;  %v66_v25 = vld [vmem:[%s3200_s0 + $0x158] sm:$0xff]  ;;  %v35_v26 = vld [vmem:[%s3200_s0 + $0x60] sm:$0xff] }
   0xa   :  { %v67_v27 = vld [vmem:[%s3200_s0 + $0x160] sm:$0xff]  ;;  %v36_v28 = vld [vmem:[%s3200_s0 + $0x68] sm:$0xff]  ;;  %v37_v30 = vld [vmem:[%s3200_s0 + $0x70] sm:$0xff] }
   0xb   :  { %1485 = vmatmul.msk.f32.gmra.mxu0 %vm89_vm0, %v24_v4  ;;  %1549 = vmatmul.msk.f32.gmra.mxu1 %vm89_vm0, %v24_v4  ;;  %v68_v29 = vld [vmem:[%s3200_s0 + $0x168] sm:$0xff]  ;;  %v69_v31 = vld [vmem:[%s3200_s0 + $0x170] sm:$0xff]  ;;  %v38_v32 = vld [vmem:[%s3200_s0 + $0x78] sm:$0xff] }
   0xc   :  { %v70_v33 = vld [vmem:[%s3200_s0 + $0x178] sm:$0xff]  ;;  %v39_v36 = vld [vmem:[%s3200_s0 + $0x80] sm:$0xff]  ;;  %v40_v40 = vld [vmem:[%s3200_s0 + $0x88] sm:$0xff] }
   0xd   :  { %1517 = vmatmul.msk.f32.gmra.mxu2 %vm89_vm0, %v56_v5  ;;  %1581 = vmatmul.msk.f32.gmra.mxu3 %vm89_vm0, %v56_v5  ;;  %v71_v37 = vld [vmem:[%s3200_s0 + $0x180] sm:$0xff]  ;;  %v72_v43 = vld [vmem:[%s3200_s0 + $0x188] sm:$0xff]  ;;  %v41_v46 = vld [vmem:[%s3200_s0 + $0x90] sm:$0xff] }
   0xe   :  { %v73_v49 = vld [vmem:[%s3200_s0 + $0x190] sm:$0xff]  ;;  %v42_v52 = vld [vmem:[%s3200_s0 + $0x98] sm:$0xff]  ;;  %v43_v58 = vld [vmem:[%s3200_s0 + $0xa0] sm:$0xff] }
   0xf   :  { %v74_v55 = vld [vmem:[%s3200_s0 + $0x198] sm:$0xff]  ;;  %v75_v61 = vld [vmem:[%s3200_s0 + $0x1a0] sm:$0xff]  ;;  %v44_v0 = vld [vmem:[%s3200_s0 + $0xa8] sm:$0xff] }
  0x10   :  { %v76_v3 = vld [vmem:[%s3200_s0 + $0x1a8] sm:$0xff] }
  0x13   :  { %1486 = vmatmul.msk.f32.gmra.mxu0 %vm89_vm0, %v25_v6  ;;  %1550 = vmatmul.msk.f32.gmra.mxu1 %vm89_vm0, %v25_v6  ;;  %v45_v6 = vld [vmem:[%s3200_s0 + $0xb0] sm:$0xff] }
  0x15   :  { %1518 = vmatmul.msk.f32.gmra.mxu2 %vm89_vm0, %v57_v7  ;;  %1582 = vmatmul.msk.f32.gmra.mxu3 %vm89_vm0, %v57_v7 }
  0x1b   :  { %1487 = vmatmul.msk.f32.gmra.mxu0 %vm89_vm0, %v26_v8  ;;  %1551 = vmatmul.msk.f32.gmra.mxu1 %vm89_vm0, %v26_v8 }
  0x1d   :  { %1519 = vmatmul.msk.f32.gmra.mxu2 %vm89_vm0, %v58_v9  ;;  %1583 = vmatmul.msk.f32.gmra.mxu3 %vm89_vm0, %v58_v9  ;;  %v77_v9 = vld [vmem:[%s3200_s0 + $0x1b0] sm:$0xff] }
  0x23   :  { %1488 = vmatmul.msk.f32.gmra.mxu0 %vm89_vm0, %v27_v10  ;;  %1552 = vmatmul.msk.f32.gmra.mxu1 %vm89_vm0, %v27_v10 }
  0x25   :  { %1520 = vmatmul.msk.f32.gmra.mxu2 %vm89_vm0, %v59_v11  ;;  %1584 = vmatmul.msk.f32.gmra.mxu3 %vm89_vm0, %v59_v11 }
  0x2b   :  { %1489 = vmatmul.msk.f32.gmra.mxu0 %vm89_vm0, %v28_v12  ;;  %1553 = vmatmul.msk.f32.gmra.mxu1 %vm89_vm0, %v28_v12  ;;  %v46_v12 = vld [vmem:[%s3200_s0 + $0xb8] sm:$0xff] }
  0x2d   :  { %1521 = vmatmul.msk.f32.gmra.mxu2 %vm89_vm0, %v60_v13  ;;  %1585 = vmatmul.msk.f32.gmra.mxu3 %vm89_vm0, %v60_v13 }
  0x33   :  { %1490 = vmatmul.msk.f32.gmra.mxu0 %vm89_vm0, %v29_v14  ;;  %1554 = vmatmul.msk.f32.gmra.mxu1 %vm89_vm0, %v29_v14 }
  0x35   :  { %1522 = vmatmul.msk.f32.gmra.mxu2 %vm89_vm0, %v61_v15  ;;  %1586 = vmatmul.msk.f32.gmra.mxu3 %vm89_vm0, %v61_v15  ;;  %v78_v15 = vld [vmem:[%s3200_s0 + $0x1b8] sm:$0xff] }
  0x3b   :  { %1491 = vmatmul.msk.f32.gmra.mxu0 %vm89_vm0, %v30_v16  ;;  %1555 = vmatmul.msk.f32.gmra.mxu1 %vm89_vm0, %v30_v16 }
  0x3d   :  { %1523 = vmatmul.msk.f32.gmra.mxu2 %vm89_vm0, %v62_v17  ;;  %1587 = vmatmul.msk.f32.gmra.mxu3 %vm89_vm0, %v62_v17 }
  0x43   :  { %1492 = vmatmul.msk.f32.gmra.mxu0 %vm89_vm0, %v31_v18  ;;  %1556 = vmatmul.msk.f32.gmra.mxu1 %vm89_vm0, %v31_v18  ;;  %v47_v18 = vld [vmem:[%s3200_s0 + $0xc0] sm:$0xff] }
  0x45   :  { %1524 = vmatmul.msk.f32.gmra.mxu2 %vm89_vm0, %v63_v19  ;;  %1588 = vmatmul.msk.f32.gmra.mxu3 %vm89_vm0, %v63_v19 }
  0x4b   :  { %1493 = vmatmul.msk.f32.gmra.mxu0 %vm89_vm0, %v32_v20  ;;  %1557 = vmatmul.msk.f32.gmra.mxu1 %vm89_vm0, %v32_v20 }
  0x4d   :  { %1525 = vmatmul.msk.f32.gmra.mxu2 %vm89_vm0, %v64_v21  ;;  %1589 = vmatmul.msk.f32.gmra.mxu3 %vm89_vm0, %v64_v21  ;;  %v79_v21 = vld [vmem:[%s3200_s0 + $0x1c0] sm:$0xff] }
  0x53   :  { %1494 = vmatmul.msk.f32.gmra.mxu0 %vm89_vm0, %v33_v22  ;;  %1558 = vmatmul.msk.f32.gmra.mxu1 %vm89_vm0, %v33_v22 }
  0x55   :  { %1526 = vmatmul.msk.f32.gmra.mxu2 %vm89_vm0, %v65_v23  ;;  %1590 = vmatmul.msk.f32.gmra.mxu3 %vm89_vm0, %v65_v23 }
  0x5b   :  { %1495 = vmatmul.msk.f32.gmra.mxu0 %vm89_vm0, %v34_v24  ;;  %1559 = vmatmul.msk.f32.gmra.mxu1 %vm89_vm0, %v34_v24  ;;  %v48_v24 = vld [vmem:[%s3200_s0 + $0xc8] sm:$0xff] }
  0x5d   :  { %1527 = vmatmul.msk.f32.gmra.mxu2 %vm89_vm0, %v66_v25  ;;  %1591 = vmatmul.msk.f32.gmra.mxu3 %vm89_vm0, %v66_v25 }
  0x63   :  { %1496 = vmatmul.msk.f32.gmra.mxu0 %vm89_vm0, %v35_v26  ;;  %1560 = vmatmul.msk.f32.gmra.mxu1 %vm89_vm0, %v35_v26 }
  0x65   :  { %1528 = vmatmul.msk.f32.gmra.mxu2 %vm89_vm0, %v67_v27  ;;  %1592 = vmatmul.msk.f32.gmra.mxu3 %vm89_vm0, %v67_v27  ;;  %v80_v27 = vld [vmem:[%s3200_s0 + $0x1c8] sm:$0xff] }
  0x6b   :  { %1497 = vmatmul.msk.f32.gmra.mxu0 %vm89_vm0, %v36_v28  ;;  %1561 = vmatmul.msk.f32.gmra.mxu1 %vm89_vm0, %v36_v28 }
  0x6d   :  { %1529 = vmatmul.msk.f32.gmra.mxu2 %vm89_vm0, %v68_v29  ;;  %1593 = vmatmul.msk.f32.gmra.mxu3 %vm89_vm0, %v68_v29 }
  0x73   :  { %1498 = vmatmul.msk.f32.gmra.mxu0 %vm89_vm0, %v37_v30  ;;  %1562 = vmatmul.msk.f32.gmra.mxu1 %vm89_vm0, %v37_v30  ;;  %v49_v30 = vld [vmem:[%s3200_s0 + $0xd0] sm:$0xff] }
  0x75   :  { %1530 = vmatmul.msk.f32.gmra.mxu2 %vm89_vm0, %v69_v31  ;;  %1594 = vmatmul.msk.f32.gmra.mxu3 %vm89_vm0, %v69_v31 }
  0x7b   :  { %1499 = vmatmul.msk.f32.gmra.mxu0 %vm89_vm0, %v38_v32  ;;  %1563 = vmatmul.msk.f32.gmra.mxu1 %vm89_vm0, %v38_v32 }
  0x7d   :  { %1531 = vmatmul.msk.f32.gmra.mxu2 %vm89_vm0, %v70_v33  ;;  %1595 = vmatmul.msk.f32.gmra.mxu3 %vm89_vm0, %v70_v33  ;;  %v81_v33 = vld [vmem:[%s3200_s0 + $0x1d0] sm:$0xff] }
  0x80   :  { %v1804_v34 = vpop.f32.mrf.mxu0  ;;  %v1806_v35 = vpop.f32.mrf.mxu1 }
  0x81   :  { %3373 = vst [vmem:[#allocation4_spill] sm:$0xff] %v1806_v35 }
  0x83   :  { %1500 = vmatmul.msk.f32.gmra.mxu0 %vm89_vm0, %v39_v36  ;;  %1564 = vmatmul.msk.f32.gmra.mxu1 %vm89_vm0, %v39_v36 }
  0x85   :  { %1532 = vmatmul.msk.f32.gmra.mxu2 %vm89_vm0, %v71_v37  ;;  %1596 = vmatmul.msk.f32.gmra.mxu3 %vm89_vm0, %v71_v37 }
  0x88   :  { %v1818_v38 = vpop.f32.mrf.mxu0  ;;  %v1820_v39 = vpop.f32.mrf.mxu1 }
  0x89   :  { %3374 = vst [vmem:[#allocation5_spill] sm:$0xff] %v1820_v39  ;;  %v1825_v41 = vpop.f32.mrf.mxu2  ;;  %v1827_v42 = vpop.f32.mrf.mxu3 }
  0x8a   :  { %3375 = vst [vmem:[#allocation6_spill] sm:$0xff] %v1825_v41 }
  0x8b   :  { %3376 = vst [vmem:[#allocation7_spill] sm:$0xff] %v1827_v42  ;;  %1501 = vmatmul.msk.f32.gmra.mxu0 %vm89_vm0, %v40_v40  ;;  %1565 = vmatmul.msk.f32.gmra.mxu1 %vm89_vm0, %v40_v40  ;;  %v50_v40 = vld [vmem:[%s3200_s0 + $0xd8] sm:$0xff] }
  0x8d   :  { %1533 = vmatmul.msk.f32.gmra.mxu2 %vm89_vm0, %v72_v43  ;;  %1597 = vmatmul.msk.f32.gmra.mxu3 %vm89_vm0, %v72_v43 }
  0x90   :  { %v1836_v44 = vpop.f32.mrf.mxu0  ;;  %v1838_v45 = vpop.f32.mrf.mxu1 }
  0x91   :  { %3377 = vst [vmem:[#allocation8_spill] sm:$0xff] %v1838_v45  ;;  %v1843_v47 = vpop.f32.mrf.mxu2  ;;  %v1845_v48 = vpop.f32.mrf.mxu3 }
  0x92   :  { %3378 = vst [vmem:[#allocation9_spill] sm:$0xff] %v1843_v47 }
  0x93   :  { %3379 = vst [vmem:[#allocation10_spill] sm:$0xff] %v1845_v48  ;;  %1502 = vmatmul.msk.f32.gmra.mxu0 %vm89_vm0, %v41_v46  ;;  %1566 = vmatmul.msk.f32.gmra.mxu1 %vm89_vm0, %v41_v46 }
  0x95   :  { %1534 = vmatmul.msk.f32.gmra.mxu2 %vm89_vm0, %v73_v49  ;;  %1598 = vmatmul.msk.f32.gmra.mxu3 %vm89_vm0, %v73_v49  ;;  %v82_v49 = vld [vmem:[%s3200_s0 + $0x1d8] sm:$0xff] }
  0x98   :  { %v1854_v50 = vpop.f32.mrf.mxu0  ;;  %v1856_v51 = vpop.f32.mrf.mxu1 }
  0x99   :  { %3380 = vst [vmem:[#allocation11_spill] sm:$0xff] %v1856_v51  ;;  %v1861_v53 = vpop.f32.mrf.mxu2  ;;  %v1863_v54 = vpop.f32.mrf.mxu3 }
  0x9a   :  { %3381 = vst [vmem:[#allocation12_spill] sm:$0xff] %v1861_v53 }
  0x9b   :  { %3382 = vst [vmem:[#allocation13_spill] sm:$0xff] %v1863_v54  ;;  %1503 = vmatmul.msk.f32.gmra.mxu0 %vm89_vm0, %v42_v52  ;;  %1567 = vmatmul.msk.f32.gmra.mxu1 %vm89_vm0, %v42_v52 }
  0x9d   :  { %1535 = vmatmul.msk.f32.gmra.mxu2 %vm89_vm0, %v74_v55  ;;  %1599 = vmatmul.msk.f32.gmra.mxu3 %vm89_vm0, %v74_v55 }
  0xa0   :  { %v1872_v56 = vpop.f32.mrf.mxu0  ;;  %v1874_v57 = vpop.f32.mrf.mxu1 }
  0xa1   :  { %3383 = vst [vmem:[#allocation14_spill] sm:$0xff] %v1874_v57  ;;  %v1879_v59 = vpop.f32.mrf.mxu2  ;;  %v1881_v60 = vpop.f32.mrf.mxu3 }
  0xa2   :  { %3384 = vst [vmem:[#allocation15_spill] sm:$0xff] %v1879_v59 }
  0xa3   :  { %3385 = vst [vmem:[#allocation16_spill] sm:$0xff] %v1881_v60  ;;  %1504 = vmatmul.msk.f32.gmra.mxu0 %vm89_vm0, %v43_v58  ;;  %1568 = vmatmul.msk.f32.gmra.mxu1 %vm89_vm0, %v43_v58  ;;  %v51_v58 = vld [vmem:[%s3200_s0 + $0xe0] sm:$0xff] }
  0xa5   :  { %1536 = vmatmul.msk.f32.gmra.mxu2 %vm89_vm0, %v75_v61  ;;  %1600 = vmatmul.msk.f32.gmra.mxu3 %vm89_vm0, %v75_v61 }
  0xa8   :  { %v1890_v62 = vpop.f32.mrf.mxu0  ;;  %v1892_v63 = vpop.f32.mrf.mxu1 }
  0xa9   :  { %3386 = vst [vmem:[#allocation17_spill] sm:$0xff] %v1892_v63  ;;  %v1897_v1 = vpop.f32.mrf.mxu2  ;;  %v1899_v2 = vpop.f32.mrf.mxu3 }
  0xaa   :  { %3387 = vst [vmem:[#allocation18_spill] sm:$0xff] %v1897_v1 }
  0xab   :  { %3388 = vst [vmem:[#allocation19_spill] sm:$0xff] %v1899_v2  ;;  %1505 = vmatmul.msk.f32.gmra.mxu0 %vm89_vm0, %v44_v0  ;;  %1569 = vmatmul.msk.f32.gmra.mxu1 %vm89_vm0, %v44_v0 }
  0xad   :  { %1537 = vmatmul.msk.f32.gmra.mxu2 %vm89_vm0, %v76_v3  ;;  %1601 = vmatmul.msk.f32.gmra.mxu3 %vm89_vm0, %v76_v3  ;;  %v83_v3 = vld [vmem:[%s3200_s0 + $0x1e0] sm:$0xff] }
  0xb0   :  { %v1908_v4 = vpop.f32.mrf.mxu0  ;;  %v1910_v5 = vpop.f32.mrf.mxu1 }
  0xb1   :  { %3389 = vst [vmem:[#allocation20_spill] sm:$0xff] %v1910_v5  ;;  %v1915_v7 = vpop.f32.mrf.mxu2  ;;  %v1917_v8 = vpop.f32.mrf.mxu3 }
  0xb2   :  { %3390 = vst [vmem:[#allocation21_spill] sm:$0xff] %v1915_v7 }
  0xb3   :  { %3391 = vst [vmem:[#allocation22_spill] sm:$0xff] %v1917_v8  ;;  %1506 = vmatmul.msk.f32.gmra.mxu0 %vm89_vm0, %v45_v6  ;;  %1570 = vmatmul.msk.f32.gmra.mxu1 %vm89_vm0, %v45_v6 }
  0xb5   :  { %1538 = vmatmul.msk.f32.gmra.mxu2 %vm89_vm0, %v77_v9  ;;  %1602 = vmatmul.msk.f32.gmra.mxu3 %vm89_vm0, %v77_v9 }
  0xb8   :  { %v1926_v10 = vpop.f32.mrf.mxu0  ;;  %v1928_v11 = vpop.f32.mrf.mxu1 }
  0xb9   :  { %3392 = vst [vmem:[#allocation23_spill] sm:$0xff] %v1928_v11  ;;  %v1933_v13 = vpop.f32.mrf.mxu2  ;;  %v1935_v14 = vpop.f32.mrf.mxu3 }
  0xba   :  { %3393 = vst [vmem:[#allocation24_spill] sm:$0xff] %v1933_v13 }
  0xbb   :  { %3394 = vst [vmem:[#allocation25_spill] sm:$0xff] %v1935_v14  ;;  %1507 = vmatmul.msk.f32.gmra.mxu0 %vm89_vm0, %v46_v12  ;;  %1571 = vmatmul.msk.f32.gmra.mxu1 %vm89_vm0, %v46_v12  ;;  %v52_v12 = vld [vmem:[%s3200_s0 + $0xe8] sm:$0xff] }
  0xbd   :  { %1539 = vmatmul.msk.f32.gmra.mxu2 %vm89_vm0, %v78_v15  ;;  %1603 = vmatmul.msk.f32.gmra.mxu3 %vm89_vm0, %v78_v15 }
  0xc0   :  { %v1944_v16 = vpop.f32.mrf.mxu0  ;;  %v1946_v17 = vpop.f32.mrf.mxu1 }
  0xc1   :  { %3395 = vst [vmem:[#allocation26_spill] sm:$0xff] %v1946_v17  ;;  %v1951_v19 = vpop.f32.mrf.mxu2  ;;  %v1953_v20 = vpop.f32.mrf.mxu3 }
  0xc2   :  { %3396 = vst [vmem:[#allocation27_spill] sm:$0xff] %v1951_v19 }
  0xc3   :  { %3397 = vst [vmem:[#allocation28_spill] sm:$0xff] %v1953_v20  ;;  %1508 = vmatmul.msk.f32.gmra.mxu0 %vm89_vm0, %v47_v18  ;;  %1572 = vmatmul.msk.f32.gmra.mxu1 %vm89_vm0, %v47_v18 }
  0xc5   :  { %1540 = vmatmul.msk.f32.gmra.mxu2 %vm89_vm0, %v79_v21  ;;  %1604 = vmatmul.msk.f32.gmra.mxu3 %vm89_vm0, %v79_v21  ;;  %v84_v21 = vld [vmem:[%s3200_s0 + $0x1e8] sm:$0xff] }
  0xc8   :  { %v1962_v22 = vpop.f32.mrf.mxu0  ;;  %v1964_v23 = vpop.f32.mrf.mxu1 }
  0xc9   :  { %3398 = vst [vmem:[#allocation29_spill] sm:$0xff] %v1964_v23  ;;  %v1969_v25 = vpop.f32.mrf.mxu2  ;;  %v1971_v26 = vpop.f32.mrf.mxu3 }
  0xca   :  { %3399 = vst [vmem:[#allocation30_spill] sm:$0xff] %v1969_v25 }
  0xcb   :  { %3400 = vst [vmem:[#allocation31_spill] sm:$0xff] %v1971_v26  ;;  %1509 = vmatmul.msk.f32.gmra.mxu0 %vm89_vm0, %v48_v24  ;;  %1573 = vmatmul.msk.f32.gmra.mxu1 %vm89_vm0, %v48_v24 }
  0xcd   :  { %1541 = vmatmul.msk.f32.gmra.mxu2 %vm89_vm0, %v80_v27  ;;  %1605 = vmatmul.msk.f32.gmra.mxu3 %vm89_vm0, %v80_v27 }
  0xd0   :  { %v1980_v28 = vpop.f32.mrf.mxu0  ;;  %v1982_v29 = vpop.f32.mrf.mxu1 }
  0xd1   :  { %3401 = vst [vmem:[#allocation32_spill] sm:$0xff] %v1982_v29  ;;  %v1987_v31 = vpop.f32.mrf.mxu2  ;;  %v1989_v32 = vpop.f32.mrf.mxu3 }
  0xd2   :  { %3402 = vst [vmem:[#allocation33_spill] sm:$0xff] %v1987_v31 }
  0xd3   :  { %3403 = vst [vmem:[#allocation34_spill] sm:$0xff] %v1989_v32  ;;  %1510 = vmatmul.msk.f32.gmra.mxu0 %vm89_vm0, %v49_v30  ;;  %1574 = vmatmul.msk.f32.gmra.mxu1 %vm89_vm0, %v49_v30  ;;  %v53_v30 = vld [vmem:[%s3200_s0 + $0xf0] sm:$0xff] }
  0xd5   :  { %1542 = vmatmul.msk.f32.gmra.mxu2 %vm89_vm0, %v81_v33  ;;  %1606 = vmatmul.msk.f32.gmra.mxu3 %vm89_vm0, %v81_v33 }
  0xd8   :  { %v1998_v36 = vpop.f32.mrf.mxu0  ;;  %v2000_v37 = vpop.f32.mrf.mxu1 }
  0xd9   :  { %3404 = vst [vmem:[#allocation35_spill] sm:$0xff] %v2000_v37  ;;  %v2005_v43 = vpop.f32.mrf.mxu2  ;;  %v2007_v46 = vpop.f32.mrf.mxu3 }
  0xda   :  { %3405 = vst [vmem:[#allocation36_spill] sm:$0xff] %v2005_v43 }
  0xdb   :  { %3406 = vst [vmem:[#allocation37_spill] sm:$0xff] %v2007_v46  ;;  %1511 = vmatmul.msk.f32.gmra.mxu0 %vm89_vm0, %v50_v40  ;;  %1575 = vmatmul.msk.f32.gmra.mxu1 %vm89_vm0, %v50_v40 }
  0xdd   :  { %1543 = vmatmul.msk.f32.gmra.mxu2 %vm89_vm0, %v82_v49  ;;  %1607 = vmatmul.msk.f32.gmra.mxu3 %vm89_vm0, %v82_v49  ;;  %v85_v49 = vld [vmem:[%s3200_s0 + $0x1f0] sm:$0xff] }
  0xe0   :  { %v2016_v52 = vpop.f32.mrf.mxu0  ;;  %v2018_v55 = vpop.f32.mrf.mxu1 }
  0xe1   :  { %3407 = vst [vmem:[#allocation38_spill] sm:$0xff] %v2018_v55  ;;  %v2023_v61 = vpop.f32.mrf.mxu2  ;;  %v2025_v0 = vpop.f32.mrf.mxu3 }
  0xe2   :  { %3408 = vst [vmem:[#allocation39_spill] sm:$0xff] %v2023_v61 }
  0xe3   :  { %3409 = vst [vmem:[#allocation40_spill] sm:$0xff] %v2025_v0  ;;  %1512 = vmatmul.msk.f32.gmra.mxu0 %vm89_vm0, %v51_v58  ;;  %1576 = vmatmul.msk.f32.gmra.mxu1 %vm89_vm0, %v51_v58 }
  0xe5   :  { %1544 = vmatmul.msk.f32.gmra.mxu2 %vm89_vm0, %v83_v3  ;;  %1608 = vmatmul.msk.f32.gmra.mxu3 %vm89_vm0, %v83_v3 }
  0xe8   :  { %v2034_v6 = vpop.f32.mrf.mxu0  ;;  %v2036_v9 = vpop.f32.mrf.mxu1 }
  0xe9   :  { %3410 = vst [vmem:[#allocation41_spill] sm:$0xff] %v2036_v9  ;;  %v2041_v15 = vpop.f32.mrf.mxu2  ;;  %v2043_v18 = vpop.f32.mrf.mxu3  ;;  %v86_v9 = vld [vmem:[%s3200_s0 + $0x1f8] sm:$0xff] }
  0xea   :  { %3411 = vst [vmem:[#allocation42_spill] sm:$0xff] %v2041_v15 }
  0xeb   :  { %3412 = vst [vmem:[#allocation43_spill] sm:$0xff] %v2043_v18  ;;  %1513 = vmatmul.msk.f32.gmra.mxu0 %vm89_vm0, %v52_v12  ;;  %1577 = vmatmul.msk.f32.gmra.mxu1 %vm89_vm0, %v52_v12  ;;  %v54_v12 = vld [vmem:[%s3200_s0 + $0xf8] sm:$0xff] }
  0xed   :  { %1545 = vmatmul.msk.f32.gmra.mxu2 %vm89_vm0, %v84_v21  ;;  %1609 = vmatmul.msk.f32.gmra.mxu3 %vm89_vm0, %v84_v21 }
  0xf0   :  { %v2052_v24 = vpop.f32.mrf.mxu0  ;;  %v2054_v27 = vpop.f32.mrf.mxu1 }
  0xf1   :  { %3413 = vst [vmem:[#allocation44_spill] sm:$0xff] %v2054_v27  ;;  %v2059_v33 = vpop.f32.mrf.mxu2  ;;  %v2061_v40 = vpop.f32.mrf.mxu3 }
  0xf2   :  { %3414 = vst [vmem:[#allocation45_spill] sm:$0xff] %v2059_v33 }
  0xf3   :  { %3415 = vst [vmem:[#allocation46_spill] sm:$0xff] %v2061_v40  ;;  %1514 = vmatmul.msk.f32.gmra.mxu0 %vm89_vm0, %v53_v30  ;;  %1578 = vmatmul.msk.f32.gmra.mxu1 %vm89_vm0, %v53_v30 }
  0xf5   :  { %1546 = vmatmul.msk.f32.gmra.mxu2 %vm89_vm0, %v85_v49  ;;  %1610 = vmatmul.msk.f32.gmra.mxu3 %vm89_vm0, %v85_v49 }
  0xf8   :  { %v2070_v58 = vpop.f32.mrf.mxu0  ;;  %v2072_v3 = vpop.f32.mrf.mxu1 }
  0xf9   :  { %3416 = vst [vmem:[#allocation47_spill] sm:$0xff] %v2072_v3  ;;  %v2077_v21 = vpop.f32.mrf.mxu2  ;;  %v2084_v30 = vpop.f32.mrf.mxu3 }
  0xfa   :  { %3417 = vst [vmem:[#allocation48_spill] sm:$0xff] %v2077_v21 }
  0xfb   :  { %1515 = vmatmul.msk.f32.gmra.mxu0 %vm89_vm0, %v54_v12  ;;  %1579 = vmatmul.msk.f32.gmra.mxu1 %vm89_vm0, %v54_v12  ;;  %3418 = vst [vmem:[#allocation49_spill] sm:$0xff] %v2084_v30 }
  0xfd   :  { %1547 = vmatmul.msk.f32.gmra.mxu2 %vm89_vm0, %v86_v9  ;;  %1611 = vmatmul.msk.f32.gmra.mxu3 %vm89_vm0, %v86_v9 }
 0x100   :  { %v2088_v49 = vpop.f32.mrf.mxu0  ;;  %v2090_v3 = vpop.f32.mrf.mxu1 }
 0x101   :  { %3419 = vst [vmem:[#allocation50_spill] sm:$0xff] %v2090_v3  ;;  %v2092_v37 = vpop.f32.mrf.mxu2  ;;  %v2094_v27 = vpop.f32.mrf.mxu3 }
 0x102   :  { %3420 = vst [vmem:[#allocation51_spill] sm:$0xff] %v2092_v37 }
 0x103   :  { %3421 = vst [vmem:[#allocation52_spill] sm:$0xff] %v2094_v27 }
 0x108   :  { %v2096_v23 = vpop.f32.mrf.mxu0  ;;  %v2098_v55 = vpop.f32.mrf.mxu1 }
 0x109   :  { %3422 = vst [vmem:[#allocation53_spill] sm:$0xff] %v2098_v55  ;;  %v2100_v11 = vpop.f32.mrf.mxu2  ;;  %v2102_v12 = vpop.f32.mrf.mxu3 }
 0x10a   :  { %3423 = vst [vmem:[#allocation54_spill] sm:$0xff] %v2100_v11 }
 0x10b   :  { %3424 = vst [vmem:[#allocation55_spill] sm:$0xff] %v2102_v12 }
 0x110   :  { %v2104_v30 = vpop.f32.mrf.mxu0  ;;  %v2106_v29 = vpop.f32.mrf.mxu1 }
 0x111   :  { %3425 = vst [vmem:[#allocation56_spill] sm:$0xff] %v2106_v29  ;;  %v2108_v9 = vpop.f32.mrf.mxu2  ;;  %v2116_v27 = vpop.f32.mrf.mxu3 }
 0x112   :  { %3426 = vst [vmem:[#allocation57_spill] sm:$0xff] %v2108_v9 }
 0x113   :  { %3430 = vst [vmem:[#allocation61_spill] sm:$0xff] %v2116_v27 }
 0x118   :  { %v2110_v63 = vpop.f32.mrf.mxu0  ;;  %v2112_v3 = vpop.f32.mrf.mxu1 }
 0x119   :  { %3427 = vst [vmem:[#allocation58_spill] sm:$0xff] %v2110_v63  ;;  %v2114_v40 = vpop.f32.mrf.mxu2  ;;  %v2124_v12 = vpop.f32.mrf.mxu3 }
 0x11a   :  { %3428 = vst [vmem:[#allocation59_spill] sm:$0xff] %v2112_v3 }
 0x11b   :  { %3429 = vst [vmem:[#allocation60_spill] sm:$0xff] %v2114_v40 }
 0x11c   :  { %3433 = vst [vmem:[#allocation64_spill] sm:$0xff] %v2124_v12 }
 0x120   :  { %v2118_v17 = vpop.f32.mrf.mxu0  ;;  %v2120_v55 = vpop.f32.mrf.mxu1 }
 0x121   :  { %3431 = vst [vmem:[#allocation62_spill] sm:$0xff] %v2120_v55  ;;  %v2122_v39 = vpop.f32.mrf.mxu2  ;;  %v2132_v5 = vpop.f32.mrf.mxu3 }
 0x122   :  { %3432 = vst [vmem:[#allocation63_spill] sm:$0xff] %v2122_v39 }
 0x123   :  { %3437 = vst [vmem:[#allocation68_spill] sm:$0xff] %v2132_v5  ;;  %v730_v5 = vmin.f32 %v1843_v47, %v1825_v41 }
 0x125   :  { %v732_v35 = vmin.f32 %v730_v5, %v1861_v53 }
 0x128   :  { %v2126_v51 = vpop.f32.mrf.mxu0  ;;  %v2128_v29 = vpop.f32.mrf.mxu1 }
 0x129   :  { %3434 = vst [vmem:[#allocation65_spill] sm:$0xff] %v2126_v51  ;;  %v2130_v18 = vpop.f32.mrf.mxu2  ;;  %v2142_v55 = vpop.f32.mrf.mxu3 }
 0x12a   :  { %3435 = vst [vmem:[#allocation66_spill] sm:$0xff] %v2128_v29 }
 0x12b   :  { %3436 = vst [vmem:[#allocation67_spill] sm:$0xff] %v2130_v18 }
 0x12c   :  { %3442 = vst [vmem:[#allocation73_spill] sm:$0xff] %v2142_v55 }
 0x130   :  { %v2134_v3 = vpop.f32.mrf.mxu0  ;;  %v2138_v27 = vpop.f32.mrf.mxu1 }
 0x131   :  { %3438 = vst [vmem:[#allocation69_spill] sm:$0xff] %v2134_v3  ;;  %v2136_v0 = vpop.f32.mrf.mxu2  ;;  %v2152_v46 = vpop.f32.mrf.mxu3 }
 0x132   :  { %3439 = vst [vmem:[#allocation70_spill] sm:$0xff] %v2136_v0 }
 0x133   :  { %3440 = vst [vmem:[#allocation71_spill] sm:$0xff] %v2138_v27 }
 0x134   :  { %3447 = vst [vmem:[#allocation78_spill] sm:$0xff] %v2152_v46 }
 0x138   :  { %v2140_v57 = vpop.f32.mrf.mxu0  ;;  %v2146_v12 = vpop.f32.mrf.mxu1 }
 0x139   :  { %3441 = vst [vmem:[#allocation72_spill] sm:$0xff] %v2140_v57  ;;  %v2144_v63 = vpop.f32.mrf.mxu2  ;;  %v734_v57 = vmin.f32 %v732_v35, %v1879_v59 }
 0x13a   :  { %3443 = vst [vmem:[#allocation74_spill] sm:$0xff] %v2144_v63 }
 0x13b   :  { %3444 = vst [vmem:[#allocation75_spill] sm:$0xff] %v2146_v12  ;;  %v736_v63 = vmin.f32 %v734_v57, %v1897_v1  ;;  %v700_v1 = vmin.f32 %v1804_v34, %v1836_v44 }
 0x13d   :  { %v738_v45 = vmin.f32 %v736_v63, %v1915_v7 }
 0x13f   :  { %v740_v46 = vmin.f32 %v738_v45, %v1933_v13  ;;  %v702_v45 = vmin.f32 %v700_v1, %v1872_v56  ;;  %v701_v1 = vmin.f32 %v1818_v38, %v1854_v50 }
 0x140   :  { %v2148_v51 = vpop.f32.mrf.mxu0  ;;  %v2157_v27 = vpop.f32.mrf.mxu1 }
 0x141   :  { %3445 = vst [vmem:[#allocation76_spill] sm:$0xff] %v2148_v51  ;;  %v2150_v29 = vpop.f32.mrf.mxu2  ;;  %v742_v47 = vmin.f32 %v740_v46, %v1951_v19  ;;  %v704_v13 = vmin.f32 %v702_v45, %v1908_v4 }
 0x142   :  { %3446 = vst [vmem:[#allocation77_spill] sm:$0xff] %v2150_v29  ;;  %v2166_v29 = vpop.f32.mrf.mxu3 }
 0x143   :  { %3448 = vst [vmem:[#allocation79_spill] sm:$0xff] %v2157_v27  ;;  %v744_v35 = vmin.f32 %v742_v47, %v1969_v25 }
 0x144   :  { %3451 = vst [vmem:[#allocation82_spill] sm:$0xff] %v2166_v29 }
 0x145   :  { %v746_v57 = vmin.f32 %v744_v35, %v1987_v31  ;;  %v799_v35 = vmin.f32 %v1845_v48, %v1827_v42 }
 0x147   :  { %v748_v63 = vmin.f32 %v746_v57, %v2005_v43  ;;  %v706_v57 = vmin.f32 %v704_v13, %v1944_v16 }
 0x148   :  { %v2160_v55 = vpop.f32.mrf.mxu0  ;;  %v2170_v41 = vpop.f32.mrf.mxu1 }
 0x149   :  { %3449 = vst [vmem:[#allocation80_spill] sm:$0xff] %v2160_v55  ;;  %v2163_v12 = vpop.f32.mrf.mxu2  ;;  %v750_v46 = vmin.f32 %v748_v63, %v2023_v61  ;;  %v801_v63 = vmin.f32 %v799_v35, %v1863_v54  ;;  %v708_v45 = vmin.f32 %v706_v57, %v1980_v28  ;;  %v3463_v54 = vld [vmem:[#allocation8_spill] sm:$0xff] }
 0x14a   :  { %3450 = vst [vmem:[#allocation81_spill] sm:$0xff] %v2163_v12  ;;  %v2181_v7 = vpop.f32.mrf.mxu3 }
 0x14b   :  { %3452 = vst [vmem:[#allocation83_spill] sm:$0xff] %v2170_v41  ;;  %v752_v47 = vmin.f32 %v750_v46, %v2041_v15  ;;  %v703_v15 = vmin.f32 %v701_v1, %v1890_v62  ;;  %v803_v61 = vmin.f32 %v801_v63, %v1881_v60  ;;  %v710_v48 = vmin.f32 %v708_v45, %v2016_v52 }
 0x14c   :  { %3455 = vst [vmem:[#allocation86_spill] sm:$0xff] %v2181_v7 }
 0x14d   :  { %v754_v43 = vmin.f32 %v752_v47, %v2059_v33  ;;  %v705_v13 = vmin.f32 %v703_v15, %v1926_v10  ;;  %v805_v47 = vmin.f32 %v803_v61, %v1899_v2  ;;  %v712_v35 = vmin.f32 %v710_v48, %v2052_v24 }
 0x14f   :  { %v756_v46 = vmin.f32 %v754_v43, %v2077_v21  ;;  %v707_v1 = vmin.f32 %v705_v13, %v1962_v22  ;;  %v807_v63 = vmin.f32 %v805_v47, %v1917_v8  ;;  %v714_v45 = vmin.f32 %v712_v35, %v2088_v49  ;;  %v3476_v21 = vld [vmem:[#allocation72_spill] sm:$0xff] }
 0x150   :  { %v2172_v5 = vpop.f32.mrf.mxu0  ;;  %v2193_v31 = vpop.f32.mrf.mxu1  ;;  %v3459_v13 = vmov 0  ;;  %v1616_v47 = vmov inf  }
 0x151   :  { %3453 = vst [vmem:[#allocation84_spill] sm:$0xff] %v2172_v5  ;;  %v2175_v59 = vpop.f32.mrf.mxu2  ;;  %v731_v42 = vmin.f32 %v2092_v37, %v756_v46  ;;  %v3276_v46 = vlaneseq  ;;  %v809_v61 = vmin.f32 %v807_v63, %v1935_v14  ;;  %v709_v60 = vmin.f32 %v707_v1, %v1998_v36 }
 0x152   :  { %3454 = vst [vmem:[#allocation85_spill] sm:$0xff] %v2175_v59  ;;  %v2210_v53 = vpop.f32.mrf.mxu3  ;;  %v716_v48 = vmin.f32 %v714_v45, %v2104_v30  ;;  %v1617_v45 = vmov 0  }
 0x153   :  { %3456 = vst [vmem:[#allocation87_spill] sm:$0xff] %v2193_v31  ;;  %v733_v43 = vmin.f32 %v731_v42, %v2100_v11  ;;  %vm2227_vm1 = vcmp.lt.s32.totalorder %v3276_v46, 256  ;;  %v811_v35 = vmin.f32 %v809_v61, %v1953_v20 }
 0x154   :  { %3457 = vst [vmem:[#allocation88_spill] sm:$0xff] %v2210_v53  ;;  %v3460_v13 = vsel %vm2227_vm1, 4294967295, %v3459_v13  ;;  %v718_v63 = vmin.f32 %v716_v48, %v2118_v17 }
 0x155   :  { %v735_v15 = vmin.f32 %v733_v43, %v2108_v9  ;;  %3461 = vst [vmem:[#allocation90_spill] sm:$0xff] %v3460_v13  ;;  %v711_v43 = vmin.f32 %v709_v60, %v2034_v6  ;;  %v813_v46 = vmin.f32 %v811_v35, %v1971_v26  ;;  %v3464_v35 = vld [vmem:[#allocation4_spill] sm:$0xff]  ;;  %v3468_v9 = vld [vmem:[#allocation14_spill] sm:$0xff] }
 0x156   :  { %21 = vst.msk [vmem:[#allocation2] sm:$0x3] %vm2227_vm1, %v1616_v47  ;;  %v720_v47 = vmin.f32 %v718_v63, %v2134_v3  ;;  %v769_v26 = vmin.f32 %v3464_v35, %v3463_v54  ;;  %v3466_v63 = vld [vmem:[#allocation58_spill] sm:$0xff]  ;;  %v3473_v35 = vld [vmem:[#allocation20_spill] sm:$0xff] }
 0x157   :  { %v737_v42 = vmin.f32 %v735_v15, %v2114_v40  ;;  %22 = vst.msk [vmem:[#allocation3] sm:$0x3] %vm2227_vm1, %v1617_v45  ;;  %v713_v14 = vmin.f32 %v711_v43, %v2070_v58  ;;  %v815_v48 = vmin.f32 %v813_v46, %v1989_v32  ;;  %v3465_v43 = vld [vmem:[#allocation37_spill] sm:$0xff]  ;;  %v3486_v3 = vld [vmem:[#allocation38_spill] sm:$0xff] }
 0x158   :  { %v2185_v19 = vpop.f32.mrf.mxu0  ;;  %v2221_v2 = vpop.f32.mrf.mxu1  ;;  %v722_v45 = vmin.f32 %v720_v47, %v2148_v51  ;;  %v771_v11 = vmin.f32 %v769_v26, %v3468_v9  ;;  %v3471_v47 = vld [vmem:[#allocation65_spill] sm:$0xff] }
 0x159   :  { %v2189_v25 = vpop.f32.mrf.mxu2  ;;  %3458 = vst [vmem:[#allocation89_spill] sm:$0xff] %v2221_v2  ;;  %v739_v1 = vmin.f32 %v737_v42, %v2122_v39  ;;  %v715_v42 = vmin.f32 %v713_v14, %v2096_v23  ;;  %v817_v13 = vmin.f32 %v815_v48, %v3465_v43  ;;  %v3470_v14 = vld [vmem:[#allocation40_spill] sm:$0xff] }
 0x15a   :  { %v2247_v60 = vpop.f32.mrf.mxu3  ;;  %v773_v48 = vmin.f32 %v771_v11, %v3473_v35  ;;  %v3481_v11 = vld [vmem:[#allocation46_spill] sm:$0xff] }
 0x15b   :  { %v741_v61 = vmin.f32 %v739_v1, %v2130_v18  ;;  %3462 = vst [vmem:[#allocation91_spill] sm:$0xff] %v2247_v60  ;;  %v717_v39 = vmin.f32 %v715_v42, %v3466_v63  ;;  %v724_v1 = vmin.f32 %v722_v45, %v2172_v5  ;;  %v3467_v18 = vld [vmem:[#allocation74_spill] sm:$0xff]  ;;  %v819_v32 = vmin.f32 %v817_v13, %v3470_v14  ;;  %v3475_v42 = vld [vmem:[#allocation43_spill] sm:$0xff] }
 0x15c   :  { %v3477_v13 = vld [vmem:[#allocation11_spill] sm:$0xff] }
 0x15d   :  { %v743_v8 = vmin.f32 %v741_v61, %v2136_v0  ;;  %v719_v37 = vmin.f32 %v717_v39, %v3471_v47  ;;  %v3472_v61 = vld [vmem:[#allocation77_spill] sm:$0xff]  ;;  %v821_v45 = vmin.f32 %v819_v32, %v3475_v42 }
 0x15e   :  { %v3478_v39 = vld [vmem:[#allocation5_spill] sm:$0xff] }
 0x15f   :  { %v745_v40 = vmin.f32 %v743_v8, %v3467_v18  ;;  %v721_v8 = vmin.f32 %v719_v37, %v3476_v21  ;;  %v770_v14 = vmin.f32 %v3478_v39, %v3477_v13  ;;  %v823_v35 = vmin.f32 %v821_v45, %v3481_v11  ;;  %v3482_v37 = vld [vmem:[#allocation17_spill] sm:$0xff]  ;;  %v3485_v13 = vld [vmem:[#allocation23_spill] sm:$0xff] }
 0x160   :  { %v2208_v33 = vpop.f32.mrf.mxu0  ;;  %v2260_v46 = vpop.f32.mrf.mxu1 }
 0x161   :  { %v2214_v57 = vpop.f32.mrf.mxu2  ;;  %3469 = vst [vmem:[#allocation58_spill] sm:$0xff] %v2260_v46  ;;  %v747_v0 = vmin.f32 %v745_v40, %v3472_v61  ;;  %v726_v54 = vmin.f32 %v724_v1, %v2208_v33  ;;  %v3480_v1 = vld [vmem:[#allocation26_spill] sm:$0xff]  ;;  %v723_v5 = vmin.f32 %v721_v8, %v2160_v55  ;;  %v772_v42 = vmin.f32 %v770_v14, %v3482_v37  ;;  %v3488_v8 = vld [vmem:[#allocation29_spill] sm:$0xff] }
 0x162   :  { %v2277_v40 = vpop.f32.mrf.mxu3  ;;  %v775_v61 = vmin.f32 %v773_v48, %v3480_v1  ;;  %v3487_v48 = vld [vmem:[#allocation52_spill] sm:$0xff] }
 0x163   :  { %v749_v26 = vmin.f32 %v747_v0, %v2163_v12  ;;  %3479 = vst [vmem:[#allocation93_spill] sm:$0xff] %v2277_v40  ;;  %v3483_v0 = vld [vmem:[#allocation32_spill] sm:$0xff]  ;;  %v725_v51 = vmin.f32 %v723_v5, %v2185_v19  ;;  %v774_v39 = vmin.f32 %v772_v42, %v3485_v13  ;;  %v3497_v13 = vld [vmem:[#allocation41_spill] sm:$0xff] }
 0x164   :  { %v777_v12 = vmin.f32 %v775_v61, %v3483_v0  ;;  %v3491_v61 = vld [vmem:[#allocation44_spill] sm:$0xff] }
 0x165   :  { %v751_v32 = vmin.f32 %v749_v26, %v2175_v59  ;;  %v776_v11 = vmin.f32 %v774_v39, %v3488_v8 }
 0x166   :  { %v779_v47 = vmin.f32 %v777_v12, %v3486_v3  ;;  %v3493_v12 = vld [vmem:[#allocation35_spill] sm:$0xff] }
 0x168   :  { %v2239_v15 = vpop.f32.mrf.mxu0  ;;  %v2292_v26 = vpop.f32.mrf.mxu1  ;;  %v781_v0 = vmin.f32 %v779_v47, %v3491_v61  ;;  %v3498_v47 = vld [vmem:[#allocation56_spill] sm:$0xff] }
 0x169   :  { %v2245_v20 = vpop.f32.mrf.mxu2  ;;  %v727_v45 = vmin.f32 %v725_v51, %v2239_v15  ;;  %3489 = vst [vmem:[#allocation94_spill] sm:$0xff] %v2292_v26 }
 0x16a   :  { %v2305_v8 = vpop.f32.mrf.mxu3 }
 0x16b   :  { %3496 = vst [vmem:[#allocation96_spill] sm:$0xff] %v2305_v8 }
 0x170   :  { %v2267_v43 = vpop.f32.mrf.mxu0 }
 0x171   :  { %3474 = vst [vmem:[#allocation92_spill] sm:$0xff] %v2267_v43  ;;  %v728_v9 = vmin.f32 %v726_v54, %v2267_v43  ;;  %v2273_v18 = vpop.f32.mrf.mxu2  ;;  %v3484_v54 = vld [vmem:[#allocation49_spill] sm:$0xff] }
 0x172   :  { %v825_v43 = vmin.f32 %v823_v35, %v3484_v54  ;;  %v3492_v35 = vld [vmem:[#allocation55_spill] sm:$0xff] }
 0x173   :  { %v753_v21 = vmin.f32 %v751_v32, %v728_v9  ;;  %v3494_v32 = vld [vmem:[#allocation50_spill] sm:$0xff] }
 0x174   :  { %v800_v1 = vmin.f32 %v3487_v48, %v825_v43  ;;  %v778_v43 = vmin.f32 %v776_v11, %v3493_v12  ;;  %v783_v51 = vmin.f32 %v781_v0, %v3494_v32  ;;  %v3495_v48 = vld [vmem:[#allocation61_spill] sm:$0xff]  ;;  %v3502_v11 = vld [vmem:[#allocation68_spill] sm:$0xff] }
 0x175   :  { %v755_v9 = vmin.f32 %v753_v21, %v2189_v25  ;;  %v3505_v32 = vld [vmem:[#allocation73_spill] sm:$0xff] }
 0x176   :  { %v802_v54 = vmin.f32 %v800_v1, %v3492_v35  ;;  %v780_v37 = vmin.f32 %v778_v43, %v3497_v13  ;;  %v785_v61 = vmin.f32 %v783_v51, %v3498_v47  ;;  %v3499_v1 = vld [vmem:[#allocation64_spill] sm:$0xff]  ;;  %v2319_v47 = vpop.f32.mrf.mxu1 }
 0x177   :  { %3506 = vst [vmem:[#allocation97_spill] sm:$0xff] %v2319_v47 }
 0x178   :  { %v2294_v14 = vpop.f32.mrf.mxu0  ;;  %v804_v39 = vmin.f32 %v802_v54, %v3495_v48  ;;  %v3503_v54 = vld [vmem:[#allocation53_spill] sm:$0xff] }
 0x179   :  { %3490 = vst [vmem:[#allocation95_spill] sm:$0xff] %v2294_v14  ;;  %v729_v5 = vmin.f32 %v727_v45, %v2294_v14  ;;  %v2300_v42 = vpop.f32.mrf.mxu2  ;;  %v3500_v45 = vld [vmem:[#allocation47_spill] sm:$0xff]  ;;  %v3501_v14 = vld [vmem:[#allocation62_spill] sm:$0xff] }
 0x17a   :  { %v806_v35 = vmin.f32 %v804_v39, %v3499_v1  ;;  %v782_v59 = vmin.f32 %v780_v37, %v3500_v45  ;;  %v787_v55 = vmin.f32 %v785_v61, %v3501_v14  ;;  %v3508_v1 = vld [vmem:[#allocation78_spill] sm:$0xff] }
 0x17b   :  { %v757_v3 = vmin.f32 %v755_v9, %v729_v5  ;;  %v3504_v5 = vld [vmem:[#allocation71_spill] sm:$0xff] }
 0x17c   :  { %v808_v12 = vmin.f32 %v806_v35, %v3502_v11  ;;  %v784_v9 = vmin.f32 %v782_v59, %v3503_v54  ;;  %v789_v48 = vmin.f32 %v787_v55, %v3504_v5  ;;  %v3509_v11 = vld [vmem:[#allocation66_spill] sm:$0xff]  ;;  %v3511_v5 = vld [vmem:[#allocation75_spill] sm:$0xff] }
 0x17d   :  { %v758_v21 = vmin.f32 %v2214_v57, %v757_v3  ;;  %v3507_v3 = vld [vmem:[#allocation59_spill] sm:$0xff] }
 0x17e   :  { %v810_v43 = vmin.f32 %v808_v12, %v3505_v32  ;;  %v786_v37 = vmin.f32 %v784_v9, %v3507_v3  ;;  %v791_v61 = vmin.f32 %v789_v48, %v2157_v27  ;;  %v2331_v32 = vpop.f32.mrf.mxu3 }
 0x17f   :  { %v759_v0 = vmin.f32 %v2245_v20, %v758_v21  ;;  %3510 = vst [vmem:[#allocation98_spill] sm:$0xff] %v2331_v32 }
 0x180   :  { %v812_v35 = vmin.f32 %v810_v43, %v3508_v1  ;;  %v788_v59 = vmin.f32 %v786_v37, %v3509_v11  ;;  %v793_v55 = vmin.f32 %v791_v61, %v2193_v31 }
 0x181   :  { %v760_v51 = vmin.f32 %v2273_v18, %v759_v0  ;;  %v2321_v39 = vpop.f32.mrf.mxu2 }
 0x182   :  { %v814_v12 = vmin.f32 %v812_v35, %v2166_v29  ;;  %v790_v14 = vmin.f32 %v788_v59, %v3511_v5  ;;  %v795_v48 = vmin.f32 %v793_v55, %v2260_v46 }
 0x183   :  { %v761_v21 = vmin.f32 %v2300_v42, %v760_v51 }
 0x184   :  { %v816_v9 = vmin.f32 %v814_v12, %v2181_v7  ;;  %v792_v43 = vmin.f32 %v790_v14, %v2170_v41  ;;  %v797_v37 = vmin.f32 %v795_v48, %v2319_v47 }
 0x185   :  { %v762_v0 = vmin.f32 %v2321_v39, %v761_v21  ;;  %v2341_v21 = vpop.f32.mrf.mxu1 }
 0x186   :  { %v818_v51 = vmin.f32 %v816_v9, %v2210_v53  ;;  %v794_v61 = vmin.f32 %v792_v43, %v2221_v2  ;;  %3512 = vst [vmem:[#allocation99_spill] sm:$0xff] %v2341_v21  ;;  %v2345_v55 = vpop.f32.mrf.mxu3  ;;  %v3514_v9 = vlaneseq }
 0x187   :  { %v763_v27 = vrot.slane %v762_v0, 4  ;;  %3513 = vst [vmem:[#allocation100_spill] sm:$0xff] %v2345_v55 }
 0x188   :  { %v820_v35 = vmin.f32 %v818_v51, %v2247_v60  ;;  %v796_v59 = vmin.f32 %v794_v61, %v2292_v26  ;;  %v2349_v53 = vshrl.u32 %v3514_v9, 7 }
 0x189   :  { %v764_v29 = vmin.f32 %v762_v0, %v763_v27 }
 0x18a   :  { %v822_v1 = vmin.f32 %v820_v35, %v797_v37  ;;  %v798_v12 = vmin.f32 %v796_v59, %v2341_v21  ;;  %v2352_v51 = vadd.s32 8, %v2349_v53  ;;  %v2355_v27 = vadd.s32 16, %v2349_v53 }
 0x18b   :  { %v765_v7 = vrot.slane %v764_v29, 2  ;;  %v2358_v0 = vadd.s32 24, %v2349_v53  ;;  %v2361_v37 = vadd.s32 32, %v2349_v53  ;;  %v2364_v61 = vadd.s32 40, %v2349_v53 }
 0x18c   :  { %v824_v14 = vmin.f32 %v822_v1, %v2277_v40  ;;  %3515 = vst [vmem:[#allocation101_spill] sm:$0xff] %v2352_v51  ;;  %v2368_v35 = vadd.s32 48, %v2349_v53  ;;  %v2383_v9 = vadd.s32 88, %v2349_v53  ;;  %v2392_v40 = vadd.s32 112, %v2349_v53 }
 0x18d   :  { %v766_v43 = vmin.f32 %v764_v29, %v765_v7  ;;  %3516 = vst [vmem:[#allocation102_spill] sm:$0xff] %v2355_v27  ;;  %v2371_v7 = vadd.s32 56, %v2349_v53  ;;  %v2374_v29 = vadd.s32 64, %v2349_v53  ;;  %v2395_v60 = vadd.s32 120, %v2349_v53 }
 0x18e   :  { %v826_v48 = vmin.f32 %v824_v14, %v798_v12  ;;  %3517 = vst [vmem:[#allocation103_spill] sm:$0xff] %v2358_v0  ;;  %v2377_v12 = vadd.s32 72, %v2349_v53  ;;  %v2380_v14 = vadd.s32 80, %v2349_v53  ;;  %v2397_v21 = vpop.f32.mrf.mxu3  ;;  %v2400_v47 = vadd.s32 128, %v2349_v53 }
 0x18f   :  { %3518 = vst [vmem:[#allocation104_spill] sm:$0xff] %v2368_v35  ;;  %v767_v59 = vrot.slane %v766_v43, 1  ;;  %v2403_v46 = vadd.s32 136, %v2349_v53  ;;  %v2406_v2 = vadd.s32 144, %v2349_v53  ;;  %v2409_v31 = vadd.s32 152, %v2349_v53 }
 0x190   :  { %v827_v1 = vmin.f32 %v2305_v8, %v826_v48  ;;  %3519 = vst [vmem:[#allocation105_spill] sm:$0xff] %v2371_v7  ;;  %v2386_v48 = vadd.s32 96, %v2349_v53  ;;  %v2389_v8 = vadd.s32 104, %v2349_v53  ;;  %v2413_v5 = vadd.s32 160, %v2349_v53 }
 0x191   :  { %3520 = vst [vmem:[#allocation106_spill] sm:$0xff] %v2397_v21  ;;  %v2416_v11 = vadd.s32 168, %v2349_v53  ;;  %v2419_v3 = vadd.s32 176, %v2349_v53  ;;  %v2421_v54 = vmin.f32 %v766_v43, %v767_v59  ;;  %v2424_v45 = vadd.s32 184, %v2349_v53 }
 0x192   :  { %3521 = vst [vmem:[#allocation107_spill] sm:$0xff] %v2409_v31  ;;  %v828_v41 = vmin.f32 %v2331_v32, %v827_v1  ;;  %v2427_v13 = vadd.s32 192, %v2349_v53  ;;  %v2430_v26 = vadd.s32 200, %v2349_v53  ;;  %v2433_v1 = vadd.s32 208, %v2349_v53 }
 0x193   :  { %3522 = vst [vmem:[#allocation108_spill] sm:$0xff] %v2413_v5  ;;  %v2436_v32 = vadd.s32 216, %v2349_v53  ;;  %v2442_v43 = vadd.s32 232, %v2349_v53  ;;  %v2445_v59 = vadd.s32 240, %v2349_v53  ;;  %v2461_v5 = vadd.s32 280, %v2349_v53 }
 0x194   :  { %3523 = vst [vmem:[#allocation109_spill] sm:$0xff] %v2416_v11  ;;  %v2439_v11 = vadd.s32 224, %v2349_v53  ;;  %v2464_v31 = vadd.s32 288, %v2349_v53  ;;  %vm903_vm2 = vcmp.eq.f32.partialorder %v1804_v34, %v2421_v54  ;;  %vm905_vm3 = vcmp.eq.f32.partialorder %v1818_v38, %v2421_v54 }
 0x195   :  { %3524 = vst [vmem:[#allocation110_spill] sm:$0xff] %v2419_v3  ;;  %v2458_v3 = vadd.s32 272, %v2349_v53  ;;  %vm907_vm4 = vcmp.eq.f32.partialorder %v1836_v44, %v2421_v54  ;;  %vm909_vm5 = vcmp.eq.f32.partialorder %v1854_v50, %v2421_v54  ;;  %v2487_v34 = vadd.s32 328, %v2349_v53 }
 0x196   :  { %3525 = vst [vmem:[#allocation111_spill] sm:$0xff] %v2424_v45  ;;  %v829_v45 = vmin.f32 %v2345_v55, %v828_v41  ;;  %v2476_v41 = vadd.s32 304, %v2349_v53  ;;  %v2479_v55 = vadd.s32 312, %v2349_v53  ;;  %v2490_v38 = vadd.s32 336, %v2349_v53 }
 0x197   :  { %3526 = vst [vmem:[#allocation112_spill] sm:$0xff] %v2427_v13  ;;  %v2448_v13 = vadd.s32 248, %v2349_v53  ;;  %v2493_v44 = vadd.s32 344, %v2349_v53  ;;  %v1035_v50 = vsel %vm907_vm4, %v2355_v27, 2147483647  ;;  %vm911_vm6 = vcmp.eq.f32.partialorder %v1872_v56, %v2421_v54 }
 0x198   :  { %3527 = vst [vmem:[#allocation113_spill] sm:$0xff] %v2430_v26  ;;  %v2451_v26 = vadd.s32 256, %v2349_v53  ;;  %v2520_v27 = vadd.s32 392, %v2349_v53  ;;  %v2523_v56 = vadd.s32 400, %v2349_v53  ;;  %vm913_vm8 = vcmp.eq.f32.partialorder %v1890_v62, %v2421_v54 }
 0x199   :  { %3528 = vst [vmem:[#allocation114_spill] sm:$0xff] %v2433_v1  ;;  %v2454_v1 = vadd.s32 264, %v2349_v53  ;;  %vm915_vm10 = vcmp.eq.f32.partialorder %v1908_v4, %v2421_v54  ;;  %vm957_vm11 = vcmp.eq.f32.partialorder %v2185_v19, %v2421_v54  ;;  %vm959_vm13 = vcmp.eq.f32.partialorder %v2208_v33, %v2421_v54 }
 0x19a   :  { %3529 = vst [vmem:[#allocation115_spill] sm:$0xff] %v2436_v32  ;;  %vm961_vm14 = vcmp.eq.f32.partialorder %v2239_v15, %v2421_v54  ;;  %v1041_v62 = vsel %vm913_vm8, %v2364_v61, 2147483647  ;;  %vm917_vm15 = vcmp.eq.f32.partialorder %v1926_v10, %v2421_v54  ;;  %v1043_v4 = vsel %vm915_vm10, %v2368_v35, 2147483647 }
 0x19b   :  { %3530 = vst [vmem:[#allocation116_spill] sm:$0xff] %v2439_v11  ;;  %v2556_v15 = vsel %vm957_vm11, %v2436_v32, 2147483647  ;;  %v2565_v10 = vadd.s32 464, %v2349_v53  ;;  %v2575_v32 = vadd.s32 488, %v2349_v53  ;;  %vm921_vm4 = vcmp.eq.f32.partialorder %v1962_v22, %v2421_v54 }
 0x19c   :  { %3531 = vst [vmem:[#allocation117_spill] sm:$0xff] %v2445_v59  ;;  %v2467_v59 = vadd.s32 296, %v2349_v53  ;;  %v2583_v35 = vadd.s32 504, %v2349_v53  ;;  %vm929_vm10 = vcmp.eq.f32.partialorder %v2034_v6, %v2421_v54  ;;  %vm931_vm11 = vcmp.eq.f32.partialorder %v2052_v24, %v2421_v54 }
 0x19d   :  { %3532 = vst [vmem:[#allocation118_spill] sm:$0xff] %v2454_v1 }
 0x19e   :  { %3533 = vst [vmem:[#allocation119_spill] sm:$0xff] %v2458_v3 }
 0x19f   :  { %3534 = vst [vmem:[#allocation120_spill] sm:$0xff] %v2461_v5  ;;  %v2503_v5 = vadd.s32 360, %v2349_v53 }
 0x1a0   :  { %3535 = vst [vmem:[#allocation121_spill] sm:$0xff] %v2464_v31  ;;  %v2482_v31 = vadd.s32 320, %v2349_v53 }
 0x1a1   :  { %3536 = vst [vmem:[#allocation122_spill] sm:$0xff] %v2467_v59  ;;  %v1031_v59 = vsel %vm903_vm2, %v2349_v53, 2147483647  ;;  %vm919_vm2 = vcmp.eq.f32.partialorder %v1944_v16, %v2421_v54 }
 0x1a2   :  { %3537 = vst [vmem:[#allocation123_spill] sm:$0xff] %v2476_v41  ;;  %v2496_v41 = vadd.s32 352, %v2349_v53  ;;  %vm1159_vm7 = vcmp.lt.s32.totalorder %v1031_v59, %v1035_v50 }
 0x1a3   :  { %3538 = vst [vmem:[#allocation124_spill] sm:$0xff] %v2479_v55  ;;  %v830_v55 = vmin.f32 %v2397_v21, %v829_v45  ;;  %v2514_v45 = vadd.s32 376, %v2349_v53  ;;  %v2517_v21 = vadd.s32 384, %v2349_v53 }
 0x1a4   :  { %3539 = vst [vmem:[#allocation125_spill] sm:$0xff] %v2482_v31  ;;  %v1033_v31 = vsel %vm905_vm3, %v2352_v51, 2147483647  ;;  %v1160_v51 = vsel %vm1159_vm7, %v1031_v59, %v1035_v50  ;;  %v2533_v59 = vadd.s32 416, %v2349_v53  ;;  %v2568_v50 = vadd.s32 472, %v2349_v53 }
 0x1a5   :  { %3540 = vst [vmem:[#allocation126_spill] sm:$0xff] %v2487_v34  ;;  %vm925_vm7 = vcmp.eq.f32.partialorder %v1998_v36, %v2421_v54 }
 0x1a6   :  { %3541 = vst [vmem:[#allocation127_spill] sm:$0xff] %v2490_v38  ;;  %v1037_v38 = vsel %vm909_vm5, %v2358_v0, 2147483647  ;;  %v2528_v0 = vadd.s32 408, %v2349_v53 }
 0x1a7   :  { %3542 = vst [vmem:[#allocation128_spill] sm:$0xff] %v2493_v44  ;;  %v2508_v44 = vpop.f32.mrf.mxu3  ;;  %vm1161_vm9 = vcmp.lt.s32.totalorder %v1033_v31, %v1037_v38 }
 0x1a8   :  { %3543 = vst [vmem:[#allocation129_spill] sm:$0xff] %v2496_v41  ;;  %v2511_v41 = vadd.s32 368, %v2349_v53 }
 0x1a9   :  { %3544 = vst [vmem:[#allocation130_spill] sm:$0xff] %v2503_v5  ;;  %v831_v5 = vmin.f32 %v2508_v44, %v830_v55  ;;  %v2545_v55 = vadd.s32 424, %v2349_v53 }
 0x1aa   :  { %3545 = vst [vmem:[#allocation131_spill] sm:$0xff] %v2508_v44  ;;  %v1045_v44 = vsel %vm917_vm15, %v2371_v7, 2147483647  ;;  %v1049_v7 = vsel %vm921_vm4, %v2377_v12, 2147483647  ;;  %vm1019_vm15 = vcmp.eq.f32.partialorder %v2189_v25, %v2421_v54  ;;  %vm1027_vm4 = vcmp.eq.f32.partialorder %v2300_v42, %v2421_v54 }
 0x1ab   :  { %3546 = vst [vmem:[#allocation132_spill] sm:$0xff] %v2511_v41  ;;  %v1039_v41 = vsel %vm911_vm6, %v2361_v37, 2147483647  ;;  %v832_v33 = vrot.slane %v831_v5, 4  ;;  %vm923_vm6 = vcmp.eq.f32.partialorder %v1980_v28, %v2421_v54  ;;  %v1053_v25 = vsel %vm925_vm7, %v2383_v9, 2147483647 }
 0x1ac   :  { %3547 = vst [vmem:[#allocation133_spill] sm:$0xff] %v2514_v45  ;;  %v1162_v45 = vsel %vm1161_vm9, %v1033_v31, %v1037_v38  ;;  %vm1163_vm12 = vcmp.lt.s32.totalorder %v1160_v51, %v1039_v41  ;;  %v2548_v38 = vadd.s32 432, %v2349_v53  ;;  %vm927_vm9 = vcmp.eq.f32.partialorder %v2016_v52, %v2421_v54 }
 0x1ad   :  { %v1164_v31 = vsel %vm1163_vm12, %v1160_v51, %v1039_v41  ;;  %vm1165_vm0 = vcmp.lt.s32.totalorder %v1162_v45, %v1041_v62  ;;  %v2559_v51 = vsel %vm959_vm13, %v2439_v11, 2147483647  ;;  %v2562_v41 = vsel %vm961_vm14, %v2442_v43, 2147483647  ;;  %3549 = vst [vmem:[#allocation135_spill] sm:$0xff] %v2565_v10 }
 0x1ae   :  { %3548 = vst [vmem:[#allocation134_spill] sm:$0xff] %v2548_v38  ;;  %v1166_v19 = vsel %vm1165_vm0, %v1162_v45, %v1041_v62  ;;  %vm1167_vm3 = vcmp.lt.s32.totalorder %v1164_v31, %v1043_v4  ;;  %v2572_v62 = vadd.s32 480, %v2349_v53  ;;  %v2580_v11 = vadd.s32 496, %v2349_v53 }
 0x1af   :  { %3550 = vst [vmem:[#allocation136_spill] sm:$0xff] %v2568_v50  ;;  %v1168_v45 = vsel %vm1167_vm3, %v1164_v31, %v1043_v4  ;;  %vm1169_vm5 = vcmp.lt.s32.totalorder %v1166_v19, %v1045_v44  ;;  %v1047_v31 = vsel %vm919_vm2, %v2374_v29, 2147483647  ;;  %v2593_v22 = vmin.f32 %v831_v5, %v832_v33 }
 0x1b0   :  { %3551 = vst [vmem:[#allocation137_spill] sm:$0xff] %v2572_v62  ;;  %v1170_v4 = vsel %vm1169_vm5, %v1166_v19, %v1045_v44  ;;  %vm1171_vm8 = vcmp.lt.s32.totalorder %v1168_v45, %v1047_v31  ;;  %vm933_vm12 = vcmp.eq.f32.partialorder %v2070_v58, %v2421_v54  ;;  %vm935_vm13 = vcmp.eq.f32.partialorder %v2088_v49, %v2421_v54  ;;  %v3557_v49 = vld [vmem:[#allocation69_spill] sm:$0xff] }
 0x1b1   :  { %3552 = vst [vmem:[#allocation138_spill] sm:$0xff] %v2575_v32  ;;  %v1172_v16 = vsel %vm1171_vm8, %v1168_v45, %v1047_v31  ;;  %vm1173_vm14 = vcmp.lt.s32.totalorder %v1170_v4, %v1049_v7  ;;  %vm1021_vm0 = vcmp.eq.f32.partialorder %v2214_v57, %v2421_v54  ;;  %v1051_v28 = vsel %vm923_vm6, %v2380_v14, 2147483647 }
 0x1b2   :  { %3553 = vst [vmem:[#allocation139_spill] sm:$0xff] %v2580_v11  ;;  %v1174_v5 = vsel %vm1173_vm14, %v1170_v4, %v1049_v7  ;;  %vm1023_vm2 = vcmp.eq.f32.partialorder %v2245_v20, %v2421_v54  ;;  %vm1025_vm3 = vcmp.eq.f32.partialorder %v2273_v18, %v2421_v54  ;;  %vm1175_vm5 = vcmp.lt.s32.totalorder %v1172_v16, %v1051_v28 }
 0x1b3   :  { %3554 = vst [vmem:[#allocation140_spill] sm:$0xff] %v2583_v35  ;;  %vm1029_vm8 = vcmp.eq.f32.partialorder %v2321_v39, %v2421_v54  ;;  %v1055_v20 = vsel %vm927_vm9, %v2386_v48, 2147483647  ;;  %v1176_v57 = vsel %vm1175_vm5, %v1172_v16, %v1051_v28  ;;  %v1057_v18 = vsel %vm929_vm10, %v2389_v8, 2147483647  ;;  %v3555_v16 = vld [vmem:[#allocation65_spill] sm:$0xff] }
 0x1b4   :  { %v2632_v42 = vsel %vm1019_vm15, %v2565_v10, 2147483647  ;;  %v2635_v39 = vsel %vm1021_vm0, %v2568_v50, 2147483647  ;;  %vm1177_vm6 = vcmp.lt.s32.totalorder %v1174_v5, %v1053_v25  ;;  %v2638_v36 = vsel %vm1023_vm2, %v2572_v62, 2147483647 }
 0x1b5   :  { %v2641_v7 = vsel %vm1025_vm3, %v2575_v32, 2147483647  ;;  %v2644_v52 = vsel %vm1027_vm4, %v2580_v11, 2147483647  ;;  %v1178_v44 = vsel %vm1177_vm6, %v1174_v5, %v1053_v25  ;;  %vm937_vm7 = vcmp.eq.f32.partialorder %v2096_v23, %v2421_v54  ;;  %v3572_v62 = vld [vmem:[#allocation92_spill] sm:$0xff]  ;;  %v3582_v50 = vld [vmem:[#allocation27_spill] sm:$0xff] }
 0x1b6   :  { %v2649_v6 = vsel %vm1029_vm8, %v2583_v35, 2147483647  ;;  %vm1179_vm9 = vcmp.lt.s32.totalorder %v1176_v57, %v1055_v20  ;;  %vm1181_vm10 = vcmp.lt.s32.totalorder %v1178_v44, %v1057_v18  ;;  %v1059_v19 = vsel %vm931_vm11, %v2392_v40, 2147483647  ;;  %v3583_v10 = vld [vmem:[#allocation120_spill] sm:$0xff] }
 0x1b7   :  { %v1061_v33 = vsel %vm933_vm12, %v2395_v60, 2147483647  ;;  %v1180_v45 = vsel %vm1179_vm9, %v1176_v57, %v1055_v20  ;;  %v1182_v31 = vsel %vm1181_vm10, %v1178_v44, %v1057_v18  ;;  %vm939_vm14 = vcmp.eq.f32.partialorder %v2104_v30, %v2421_v54  ;;  %v3558_v20 = vld [vmem:[#allocation72_spill] sm:$0xff]  ;;  %v3560_v18 = vld [vmem:[#allocation109_spill] sm:$0xff] }
 0x1b8   :  { %vm941_vm15 = vcmp.eq.f32.partialorder %v3466_v63, %v2421_v54  ;;  %vm1183_vm0 = vcmp.lt.s32.totalorder %v1180_v45, %v1059_v19  ;;  %vm1185_vm2 = vcmp.lt.s32.totalorder %v1182_v31, %v1061_v33  ;;  %v1063_v23 = vsel %vm935_vm13, %v2400_v47, 2147483647  ;;  %v3556_v63 = vld [vmem:[#allocation107_spill] sm:$0xff] }
 0x1b9   :  { %v1065_v24 = vsel %vm937_vm7, %v2403_v46, 2147483647  ;;  %v1184_v4 = vsel %vm1183_vm0, %v1180_v45, %v1059_v19  ;;  %v1186_v58 = vsel %vm1185_vm2, %v1182_v31, %v1061_v33  ;;  %vm943_vm11 = vcmp.eq.f32.partialorder %v2118_v17, %v2421_v54  ;;  %v3559_v17 = vld [vmem:[#allocation108_spill] sm:$0xff] }
 0x1ba   :  { %vm945_vm12 = vcmp.eq.f32.partialorder %v3555_v16, %v2421_v54  ;;  %vm1187_vm3 = vcmp.lt.s32.totalorder %v1184_v4, %v1063_v23  ;;  %vm1189_vm4 = vcmp.lt.s32.totalorder %v1186_v58, %v1065_v24  ;;  %v1067_v30 = vsel %vm939_vm14, %v2406_v2, 2147483647  ;;  %v3561_v45 = vld [vmem:[#allocation76_spill] sm:$0xff] }
 0x1bb   :  { %v1069_v28 = vsel %vm941_vm15, %v3556_v63, 2147483647  ;;  %v1188_v5 = vsel %vm1187_vm3, %v1184_v4, %v1063_v23  ;;  %v1190_v25 = vsel %vm1189_vm4, %v1186_v58, %v1065_v24  ;;  %vm947_vm13 = vcmp.eq.f32.partialorder %v3557_v49, %v2421_v54  ;;  %v3562_v31 = vld [vmem:[#allocation80_spill] sm:$0xff]  ;;  %v3563_v23 = vld [vmem:[#allocation110_spill] sm:$0xff]  ;;  %v3564_v4 = vld [vmem:[#allocation111_spill] sm:$0xff] }
 0x1bc   :  { %vm949_vm5 = vcmp.eq.f32.partialorder %v3558_v20, %v2421_v54  ;;  %vm1191_vm8 = vcmp.lt.s32.totalorder %v1188_v5, %v1067_v30  ;;  %vm1193_vm6 = vcmp.lt.s32.totalorder %v1190_v25, %v1069_v28  ;;  %v1071_v57 = vsel %vm943_vm11, %v3559_v17, 2147483647 }
 0x1bd   :  { %v1073_v44 = vsel %vm945_vm12, %v3560_v18, 2147483647  ;;  %v1192_v19 = vsel %vm1191_vm8, %v1188_v5, %v1067_v30  ;;  %v1194_v33 = vsel %vm1193_vm6, %v1190_v25, %v1069_v28  ;;  %vm951_vm7 = vcmp.eq.f32.partialorder %v3561_v45, %v2421_v54  ;;  %v3566_v30 = vld [vmem:[#allocation84_spill] sm:$0xff]  ;;  %v3568_v25 = vld [vmem:[#allocation113_spill] sm:$0xff] }
 0x1be   :  { %vm953_vm9 = vcmp.eq.f32.partialorder %v3562_v31, %v2421_v54  ;;  %vm1195_vm10 = vcmp.lt.s32.totalorder %v1192_v19, %v1071_v57  ;;  %vm1197_vm14 = vcmp.lt.s32.totalorder %v1194_v33, %v1073_v44  ;;  %v1075_v24 = vsel %vm947_vm13, %v3563_v23, 2147483647  ;;  %v3567_v28 = vld [vmem:[#allocation112_spill] sm:$0xff] }
 0x1bf   :  { %v1077_v58 = vsel %vm949_vm5, %v3564_v4, 2147483647  ;;  %v1196_v16 = vsel %vm1195_vm10, %v1192_v19, %v1071_v57  ;;  %v1198_v49 = vsel %vm1197_vm14, %v1194_v33, %v1073_v44  ;;  %v2687_v20 = vadd.s32 440, %v2349_v53  ;;  %v3571_v44 = vld [vmem:[#allocation114_spill] sm:$0xff] }
 0x1c0   :  { %vm955_vm15 = vcmp.eq.f32.partialorder %v3566_v30, %v2421_v54  ;;  %vm1199_vm0 = vcmp.lt.s32.totalorder %v1196_v16, %v1075_v24  ;;  %vm1201_vm2 = vcmp.lt.s32.totalorder %v1198_v49, %v1077_v58  ;;  %v1079_v5 = vsel %vm951_vm7, %v3567_v28, 2147483647 }
 0x1c1   :  { %3565 = vst [vmem:[#allocation65_spill] sm:$0xff] %v2687_v20  ;;  %v1081_v45 = vsel %vm953_vm9, %v3568_v25, 2147483647  ;;  %v1200_v31 = vsel %vm1199_vm0, %v1196_v16, %v1075_v24  ;;  %v1202_v35 = vsel %vm1201_vm2, %v1198_v49, %v1077_v58  ;;  %v2694_v11 = vadd.s32 448, %v2349_v53  ;;  %v3573_v24 = vld [vmem:[#allocation95_spill] sm:$0xff]  ;;  %v3574_v58 = vld [vmem:[#allocation6_spill] sm:$0xff] }
 0x1c2   :  { %v2697_v57 = vadd.s32 456, %v2349_v53  ;;  %vm1203_vm11 = vcmp.lt.s32.totalorder %v1200_v31, %v1079_v5  ;;  %vm1205_vm12 = vcmp.lt.s32.totalorder %v1202_v35, %v1081_v45  ;;  %v1083_v19 = vsel %vm955_vm15, %v3571_v44, 2147483647  ;;  %v3575_v16 = vld [vmem:[#allocation9_spill] sm:$0xff] }
 0x1c3   :  { %3569 = vst [vmem:[#allocation107_spill] sm:$0xff] %v2694_v11  ;;  %v1204_v33 = vsel %vm1203_vm11, %v1200_v31, %v1079_v5  ;;  %v1206_v30 = vsel %vm1205_vm12, %v1202_v35, %v1081_v45  ;;  %vm963_vm3 = vcmp.eq.f32.partialorder %v3572_v62, %v2421_v54  ;;  %vm965_vm4 = vcmp.eq.f32.partialorder %v3573_v24, %v2421_v54  ;;  %v3576_v5 = vld [vmem:[#allocation12_spill] sm:$0xff]  ;;  %v3577_v62 = vld [vmem:[#allocation15_spill] sm:$0xff]  ;;  %v3578_v45 = vld [vmem:[#allocation117_spill] sm:$0xff] }
 0x1c4   :  { %3570 = vst [vmem:[#allocation69_spill] sm:$0xff] %v2697_v57  ;;  %vm1207_vm13 = vcmp.lt.s32.totalorder %v1204_v33, %v1083_v19  ;;  %vm1209_vm5 = vcmp.lt.s32.totalorder %v1206_v30, %v2556_v15  ;;  %vm967_vm8 = vcmp.eq.f32.partialorder %v3574_v58, %v2421_v54  ;;  %vm969_vm6 = vcmp.eq.f32.partialorder %v3575_v16, %v2421_v54 }
 0x1c5   :  { %v1208_v49 = vsel %vm1207_vm13, %v1204_v33, %v1083_v19  ;;  %v1210_v35 = vsel %vm1209_vm5, %v1206_v30, %v2556_v15  ;;  %vm971_vm7 = vcmp.eq.f32.partialorder %v3576_v5, %v2421_v54  ;;  %vm973_vm9 = vcmp.eq.f32.partialorder %v3577_v62, %v2421_v54  ;;  %v3579_v15 = vld [vmem:[#allocation18_spill] sm:$0xff]  ;;  %v3580_v33 = vld [vmem:[#allocation21_spill] sm:$0xff] }
 0x1c6   :  { %vm1211_vm10 = vcmp.lt.s32.totalorder %v1208_v49, %v2559_v51  ;;  %vm1213_vm14 = vcmp.lt.s32.totalorder %v1210_v35, %v2562_v41  ;;  %v1091_v31 = vsel %vm963_vm3, %v3578_v45, 2147483647  ;;  %v1093_v24 = vsel %vm965_vm4, %v2448_v13, 2147483647 }
 0x1c7   :  { %v1212_v32 = vsel %vm1211_vm10, %v1208_v49, %v2559_v51  ;;  %v1214_v19 = vsel %vm1213_vm14, %v1210_v35, %v2562_v41  ;;  %vm975_vm15 = vcmp.eq.f32.partialorder %v3579_v15, %v2421_v54  ;;  %vm977_vm0 = vcmp.eq.f32.partialorder %v3580_v33, %v2421_v54  ;;  %v3581_v35 = vld [vmem:[#allocation24_spill] sm:$0xff] }
 0x1c8   :  { %vm1215_vm2 = vcmp.lt.s32.totalorder %v1212_v32, %v1091_v31  ;;  %vm1217_vm11 = vcmp.lt.s32.totalorder %v1214_v19, %v1093_v24  ;;  %v1095_v30 = vsel %vm967_vm8, %v2451_v26, 2147483647  ;;  %v1097_v51 = vsel %vm969_vm6, %v2454_v1, 2147483647  ;;  %v3586_v1 = vld [vmem:[#allocation121_spill] sm:$0xff] }
 0x1c9   :  { %v1216_v49 = vsel %vm1215_vm2, %v1212_v32, %v1091_v31  ;;  %v1218_v41 = vsel %vm1217_vm11, %v1214_v19, %v1093_v24  ;;  %vm979_vm12 = vcmp.eq.f32.partialorder %v3581_v35, %v2421_v54  ;;  %vm981_vm3 = vcmp.eq.f32.partialorder %v3582_v50, %v2421_v54  ;;  %v3584_v24 = vld [vmem:[#allocation30_spill] sm:$0xff]  ;;  %v3585_v19 = vld [vmem:[#allocation33_spill] sm:$0xff] }
 0x1ca   :  { %vm1219_vm4 = vcmp.lt.s32.totalorder %v1216_v49, %v1095_v30  ;;  %vm1221_vm13 = vcmp.lt.s32.totalorder %v1218_v41, %v1097_v51  ;;  %v1099_v58 = vsel %vm971_vm7, %v2458_v3, 2147483647  ;;  %v1101_v16 = vsel %vm973_vm9, %v3583_v10, 2147483647  ;;  %v3587_v3 = vld [vmem:[#allocation122_spill] sm:$0xff]  ;;  %v3590_v10 = vld [vmem:[#allocation123_spill] sm:$0xff] }
 0x1cb   :  { %v1220_v32 = vsel %vm1219_vm4, %v1216_v49, %v1095_v30  ;;  %v1222_v31 = vsel %vm1221_vm13, %v1218_v41, %v1097_v51  ;;  %vm983_vm5 = vcmp.eq.f32.partialorder %v3584_v24, %v2421_v54  ;;  %vm985_vm8 = vcmp.eq.f32.partialorder %v3585_v19, %v2421_v54  ;;  %v3588_v49 = vld [vmem:[#allocation36_spill] sm:$0xff]  ;;  %v3589_v41 = vld [vmem:[#allocation39_spill] sm:$0xff] }
 0x1cc   :  { %vm1223_vm6 = vcmp.lt.s32.totalorder %v1220_v32, %v1099_v58  ;;  %vm1225_vm10 = vcmp.lt.s32.totalorder %v1222_v31, %v1101_v16  ;;  %v1103_v5 = vsel %vm975_vm15, %v3586_v1, 2147483647  ;;  %v1105_v62 = vsel %vm977_vm0, %v3587_v3, 2147483647  ;;  %v3591_v1 = vld [vmem:[#allocation124_spill] sm:$0xff]  ;;  %v3594_v3 = vld [vmem:[#allocation125_spill] sm:$0xff] }
 0x1cd   :  { %v1224_v30 = vsel %vm1223_vm6, %v1220_v32, %v1099_v58  ;;  %v1226_v51 = vsel %vm1225_vm10, %v1222_v31, %v1101_v16  ;;  %vm987_vm7 = vcmp.eq.f32.partialorder %v3588_v49, %v2421_v54  ;;  %vm989_vm9 = vcmp.eq.f32.partialorder %v3589_v41, %v2421_v54  ;;  %v3592_v32 = vld [vmem:[#allocation42_spill] sm:$0xff]  ;;  %v3593_v31 = vld [vmem:[#allocation45_spill] sm:$0xff] }
 0x1ce   :  { %vm1227_vm14 = vcmp.lt.s32.totalorder %v1224_v30, %v1103_v5  ;;  %vm1229_vm2 = vcmp.lt.s32.totalorder %v1226_v51, %v1105_v62  ;;  %v1107_v15 = vsel %vm979_vm12, %v3590_v10, 2147483647  ;;  %v1109_v33 = vsel %vm981_vm3, %v3591_v1, 2147483647  ;;  %v3597_v1 = vld [vmem:[#allocation127_spill] sm:$0xff] }
 0x1cf   :  { %v1228_v58 = vsel %vm1227_vm14, %v1224_v30, %v1103_v5  ;;  %v1230_v16 = vsel %vm1229_vm2, %v1226_v51, %v1105_v62  ;;  %vm991_vm15 = vcmp.eq.f32.partialorder %v3592_v32, %v2421_v54  ;;  %vm993_vm0 = vcmp.eq.f32.partialorder %v3593_v31, %v2421_v54  ;;  %v3595_v30 = vld [vmem:[#allocation48_spill] sm:$0xff]  ;;  %v3596_v51 = vld [vmem:[#allocation51_spill] sm:$0xff] }
 0x1d0   :  { %vm1231_vm11 = vcmp.lt.s32.totalorder %v1228_v58, %v1107_v15  ;;  %vm1233_vm4 = vcmp.lt.s32.totalorder %v1230_v16, %v1109_v33  ;;  %v1111_v35 = vsel %vm983_vm5, %v3594_v3, 2147483647  ;;  %v1113_v50 = vsel %vm985_vm8, %v2487_v34, 2147483647  ;;  %v3598_v3 = vld [vmem:[#allocation128_spill] sm:$0xff]  ;;  %v3601_v34 = vld [vmem:[#allocation129_spill] sm:$0xff] }
 0x1d1   :  { %v1232_v5 = vsel %vm1231_vm11, %v1228_v58, %v1107_v15  ;;  %v1234_v62 = vsel %vm1233_vm4, %v1230_v16, %v1109_v33  ;;  %vm995_vm12 = vcmp.eq.f32.partialorder %v3595_v30, %v2421_v54  ;;  %vm997_vm3 = vcmp.eq.f32.partialorder %v3596_v51, %v2421_v54  ;;  %v3599_v58 = vld [vmem:[#allocation54_spill] sm:$0xff]  ;;  %v3600_v16 = vld [vmem:[#allocation57_spill] sm:$0xff] }
 0x1d2   :  { %vm1235_vm13 = vcmp.lt.s32.totalorder %v1232_v5, %v1111_v35  ;;  %vm1237_vm6 = vcmp.lt.s32.totalorder %v1234_v62, %v1113_v50  ;;  %v1115_v24 = vsel %vm987_vm7, %v3597_v1, 2147483647  ;;  %v1117_v19 = vsel %vm989_vm9, %v3598_v3, 2147483647  ;;  %v3602_v1 = vld [vmem:[#allocation130_spill] sm:$0xff]  ;;  %v3605_v3 = vld [vmem:[#allocation132_spill] sm:$0xff] }
 0x1d3   :  { %v1236_v15 = vsel %vm1235_vm13, %v1232_v5, %v1111_v35  ;;  %v1238_v33 = vsel %vm1237_vm6, %v1234_v62, %v1113_v50  ;;  %vm999_vm5 = vcmp.eq.f32.partialorder %v3599_v58, %v2421_v54  ;;  %vm1001_vm8 = vcmp.eq.f32.partialorder %v3600_v16, %v2421_v54  ;;  %v3603_v5 = vld [vmem:[#allocation60_spill] sm:$0xff]  ;;  %v3604_v62 = vld [vmem:[#allocation63_spill] sm:$0xff] }
 0x1d4   :  { %vm1239_vm10 = vcmp.lt.s32.totalorder %v1236_v15, %v1115_v24  ;;  %vm1241_vm14 = vcmp.lt.s32.totalorder %v1238_v33, %v1117_v19  ;;  %v1119_v49 = vsel %vm991_vm15, %v3601_v34, 2147483647  ;;  %v1121_v41 = vsel %vm993_vm0, %v3602_v1, 2147483647  ;;  %v3606_v34 = vld [vmem:[#allocation133_spill] sm:$0xff] }
 0x1d5   :  { %v1240_v35 = vsel %vm1239_vm10, %v1236_v15, %v1115_v24  ;;  %v1242_v50 = vsel %vm1241_vm14, %v1238_v33, %v1117_v19  ;;  %vm1003_vm7 = vcmp.eq.f32.partialorder %v3603_v5, %v2421_v54  ;;  %vm1005_vm9 = vcmp.eq.f32.partialorder %v3604_v62, %v2421_v54  ;;  %v3607_v15 = vld [vmem:[#allocation67_spill] sm:$0xff]  ;;  %v3608_v33 = vld [vmem:[#allocation70_spill] sm:$0xff] }
 0x1d6   :  { %vm1243_vm2 = vcmp.lt.s32.totalorder %v1240_v35, %v1119_v49  ;;  %vm1245_vm11 = vcmp.lt.s32.totalorder %v1242_v50, %v1121_v41  ;;  %v1123_v32 = vsel %vm995_vm12, %v3605_v3, 2147483647  ;;  %v1125_v31 = vsel %vm997_vm3, %v3606_v34, 2147483647 }
 0x1d7   :  { %v1244_v24 = vsel %vm1243_vm2, %v1240_v35, %v1119_v49  ;;  %v1246_v19 = vsel %vm1245_vm11, %v1242_v50, %v1121_v41  ;;  %vm1007_vm15 = vcmp.eq.f32.partialorder %v3607_v15, %v2421_v54  ;;  %vm1009_vm0 = vcmp.eq.f32.partialorder %v3608_v33, %v2421_v54  ;;  %v3609_v35 = vld [vmem:[#allocation74_spill] sm:$0xff] }
 0x1d8   :  { %vm1247_vm4 = vcmp.lt.s32.totalorder %v1244_v24, %v1123_v32  ;;  %vm1249_vm13 = vcmp.lt.s32.totalorder %v1246_v19, %v1125_v31  ;;  %v1127_v30 = vsel %vm999_vm5, %v2517_v21, 2147483647  ;;  %v1129_v51 = vsel %vm1001_vm8, %v2520_v27, 2147483647 }
 0x1d9   :  { %v1248_v49 = vsel %vm1247_vm4, %v1244_v24, %v1123_v32  ;;  %v1250_v41 = vsel %vm1249_vm13, %v1246_v19, %v1125_v31  ;;  %vm1011_vm12 = vcmp.eq.f32.partialorder %v3609_v35, %v2421_v54  ;;  %v3610_v50 = vrot.slane %v2593_v22, 2  ;;  %v3611_v24 = vld [vmem:[#allocation77_spill] sm:$0xff] }
 0x1da   :  { %vm1251_vm3 = vcmp.lt.s32.totalorder %v1248_v49, %v1127_v30  ;;  %vm1253_vm6 = vcmp.lt.s32.totalorder %v1250_v41, %v1129_v51  ;;  %v1131_v58 = vsel %vm1003_vm7, %v2523_v56, 2147483647  ;;  %v1133_v16 = vsel %vm1005_vm9, %v2528_v0, 2147483647  ;;  %v3612_v19 = vld [vmem:[#allocation81_spill] sm:$0xff] }
 0x1db   :  { %v835_v34 = vmin.f32 %v2593_v22, %v3610_v50  ;;  %v1252_v32 = vsel %vm1251_vm3, %v1248_v49, %v1127_v30  ;;  %v1254_v31 = vsel %vm1253_vm6, %v1250_v41, %v1129_v51  ;;  %vm1013_vm5 = vcmp.eq.f32.partialorder %v3611_v24, %v2421_v54  ;;  %v3613_v51 = vld [vmem:[#allocation85_spill] sm:$0xff] }
 0x1dc   :  { %vm1015_vm8 = vcmp.eq.f32.partialorder %v3612_v19, %v2421_v54  ;;  %vm1255_vm10 = vcmp.lt.s32.totalorder %v1252_v32, %v1131_v58  ;;  %vm1257_vm14 = vcmp.lt.s32.totalorder %v1254_v31, %v1133_v16  ;;  %v1135_v22 = vsel %vm1007_vm15, %v2533_v59, 2147483647 }
 0x1dd   :  { %v1137_v5 = vsel %vm1009_vm0, %v2545_v55, 2147483647  ;;  %v1256_v62 = vsel %vm1255_vm10, %v1252_v32, %v1131_v58  ;;  %v1258_v30 = vsel %vm1257_vm14, %v1254_v31, %v1133_v16  ;;  %vm1017_vm7 = vcmp.eq.f32.partialorder %v3613_v51, %v2421_v54 }
 0x1de   :  { %v1139_v49 = vsel %vm1011_vm12, %v2548_v38, 2147483647  ;;  %vm1259_vm9 = vcmp.lt.s32.totalorder %v1256_v62, %v1135_v22  ;;  %vm1261_vm2 = vcmp.lt.s32.totalorder %v1258_v30, %v1137_v5  ;;  %v1141_v15 = vsel %vm1013_vm5, %v2687_v20, 2147483647  ;;  %v3637_v20 = vld [vmem:[#allocation50_spill] sm:$0xff] }
 0x1df   :  { %v1260_v41 = vsel %vm1259_vm9, %v1256_v62, %v1135_v22  ;;  %v1262_v50 = vsel %vm1261_vm2, %v1258_v30, %v1137_v5  ;;  %v836_v24 = vrot.slane %v835_v34, 1  ;;  %v1143_v33 = vsel %vm1015_vm8, %v2694_v11, 2147483647  ;;  %v2870_v22 = vld [vmem:[#allocation2] sm:$0x3] }
 0x1e0   :  { %vm1263_vm11 = vcmp.lt.s32.totalorder %v1260_v41, %v1139_v49  ;;  %vm1265_vm15 = vcmp.lt.s32.totalorder %v1262_v50, %v1141_v15  ;;  %v1145_v58 = vsel %vm1017_vm7, %v2697_v57, 2147483647  ;;  %v3636_v11 = vld [vmem:[#allocation47_spill] sm:$0xff] }
 0x1e1   :  { %v1264_v16 = vsel %vm1263_vm11, %v1260_v41, %v1139_v49  ;;  %v1266_v32 = vsel %vm1265_vm15, %v1262_v50, %v1141_v15  ;;  %v2866_v51 = vmin.f32 %v835_v34, %v836_v24  ;;  %v1435_v34 = vperm.slane %v2870_v22, 0  ;;  %v3614_v49 = vld [vmem:[#allocation94_spill] sm:$0xff]  ;;  %v3616_v15 = vld [vmem:[#allocation8_spill] sm:$0xff]  ;;  %v3617_v41 = vld [vmem:[#allocation5_spill] sm:$0xff] }
 0x1e2   :  { %vm1267_vm0 = vcmp.lt.s32.totalorder %v1264_v16, %v1143_v33  ;;  %vm1269_vm4 = vcmp.lt.s32.totalorder %v1266_v32, %v1145_v58  ;;  %v3618_v50 = vld [vmem:[#allocation11_spill] sm:$0xff] }
 0x1e3   :  { %v1268_v35 = vsel %vm1267_vm0, %v1264_v16, %v1143_v33  ;;  %v1270_v31 = vsel %vm1269_vm4, %v1266_v32, %v1145_v58  ;;  %vm962_vm5 = vcmp.eq.f32.partialorder %v3614_v49, %v2866_v51  ;;  %vm908_vm7 = vcmp.eq.f32.partialorder %v3616_v15, %v2866_v51  ;;  %v3619_v32 = vld [vmem:[#allocation102_spill] sm:$0xff]  ;;  %v3627_v15 = vld [vmem:[#allocation23_spill] sm:$0xff] }
 0x1e4   :  { %vm1271_vm13 = vcmp.lt.s32.totalorder %v1268_v35, %v2632_v42  ;;  %vm1273_vm12 = vcmp.lt.s32.totalorder %v1270_v31, %v2635_v39  ;;  %vm906_vm2 = vcmp.eq.f32.partialorder %v3617_v41, %v2866_v51  ;;  %vm910_vm11 = vcmp.eq.f32.partialorder %v3618_v50, %v2866_v51  ;;  %v3631_v41 = vld [vmem:[#allocation32_spill] sm:$0xff] }
 0x1e5   :  { %v1272_v5 = vsel %vm1271_vm13, %v1268_v35, %v2632_v42  ;;  %v1274_v19 = vsel %vm1273_vm12, %v1270_v31, %v2635_v39  ;;  %v2883_v42 = vld [vmem:[#allocation2] sm:$0x3]  ;;  %v3615_v39 = vld [vmem:[#allocation4_spill] sm:$0xff]  ;;  %v2896_v24 = vsel %vm962_vm5, %v2442_v43, 2147483647  ;;  %vm2902_vm15 = vcmp.lt.f32.partialorder %v2421_v54, %v1435_v34  ;;  %v3622_v31 = vld [vmem:[#allocation101_spill] sm:$0xff] }
 0x1e6   :  { %vm1275_vm3 = vcmp.lt.s32.totalorder %v1272_v5, %v2638_v36  ;;  %vm1277_vm6 = vcmp.lt.s32.totalorder %v1274_v19, %v2641_v7  ;;  %vm904_vm14 = vcmp.eq.f32.partialorder %v3615_v39, %v2866_v51  ;;  %v1456_v58 = vperm.slane %v2883_v42, 0  ;;  %v3625_v34 = vld [vmem:[#allocation17_spill] sm:$0xff]  ;;  %v3626_v39 = vld [vmem:[#allocation20_spill] sm:$0xff] }
 0x1e7   :  { %v1276_v62 = vsel %vm1275_vm3, %v1272_v5, %v2638_v36  ;;  %v1278_v30 = vsel %vm1277_vm6, %v1274_v19, %v2641_v7  ;;  %v1032_v16 = vsel %vm904_vm14, %v2349_v53, 2147483647  ;;  %v1036_v35 = vsel %vm908_vm7, %v3619_v32, 2147483647  ;;  %v3623_v19 = vld [vmem:[#allocation103_spill] sm:$0xff]  ;;  %v3624_v53 = vld [vmem:[#allocation14_spill] sm:$0xff] }
 0x1e8   :  { %vm1279_vm8 = vcmp.lt.s32.totalorder %v1276_v62, %v2644_v52  ;;  %vm1281_vm10 = vcmp.lt.s32.totalorder %v1278_v30, %v2649_v6  ;;  %v1034_v5 = vsel %vm906_vm2, %v3622_v31, 2147483647  ;;  %vm1294_vm4 = vcmp.lt.s32.totalorder %v1032_v16, %v1036_v35  ;;  %v3634_v32 = vld [vmem:[#allocation41_spill] sm:$0xff]  ;;  %v3635_v31 = vld [vmem:[#allocation44_spill] sm:$0xff] }
 0x1e9   :  { %v1280_v36 = vsel %vm1279_vm8, %v1276_v62, %v2644_v52  ;;  %v1282_v7 = vsel %vm1281_vm10, %v1278_v30, %v2649_v6  ;;  %v1038_v62 = vsel %vm910_vm11, %v3623_v19, 2147483647  ;;  %v2911_v30 = vsel %vm2902_vm15, %v2421_v54, %v1456_v58  ;;  %v3630_v54 = vld [vmem:[#allocation29_spill] sm:$0xff]  ;;  %v3633_v58 = vld [vmem:[#allocation38_spill] sm:$0xff] }
 0x1ea   :  { %vm1283_vm9 = vcmp.lt.s32.totalorder %v1280_v36, %v1282_v7  ;;  %vm912_vm13 = vcmp.eq.f32.partialorder %v3624_v53, %v2866_v51  ;;  %vm914_vm12 = vcmp.eq.f32.partialorder %v3625_v34, %v2866_v51  ;;  %vm916_vm3 = vcmp.eq.f32.partialorder %v3626_v39, %v2866_v51  ;;  %v3640_v53 = vld [vmem:[#allocation105_spill] sm:$0xff] }
 0x1eb   :  { %v1284_v33 = vsel %vm1283_vm9, %v1280_v36, %v1282_v7  ;;  %vm918_vm6 = vcmp.eq.f32.partialorder %v3627_v15, %v2866_v51  ;;  %vm1296_vm5 = vcmp.lt.s32.totalorder %v1034_v5, %v1038_v62  ;;  %v2921_v36 = vld [vmem:[#allocation3] sm:$0x3]  ;;  %v3629_v7 = vld [vmem:[#allocation26_spill] sm:$0xff]  ;;  %vm922_vm10 = vcmp.eq.f32.partialorder %v3630_v54, %v2866_v51  ;;  %v3644_v54 = vld [vmem:[#allocation56_spill] sm:$0xff] }
 0x1ec   :  { %v1285_v52 = vrot.slane %v1284_v33, 4  ;;  %3628 = vst [vmem:[#allocation72_spill] sm:$0xff] %v2921_v36  ;;  %vm920_vm8 = vcmp.eq.f32.partialorder %v3629_v7, %v2866_v51  ;;  %vm924_vm14 = vcmp.eq.f32.partialorder %v3631_v41, %v2866_v51  ;;  %v1295_v50 = vsel %vm1294_vm4, %v1032_v16, %v1036_v35 }
 0x1ed   :  { %v1040_v19 = vsel %vm912_vm13, %v2361_v37, 2147483647  ;;  %v1297_v16 = vsel %vm1296_vm5, %v1034_v5, %v1038_v62  ;;  %v1442_v57 = vperm.slane %v2921_v36, 0  ;;  %vm934_vm4 = vcmp.eq.f32.partialorder %v3636_v11, %v2866_v51  ;;  %v3639_v62 = vld [vmem:[#allocation53_spill] sm:$0xff] }
 0x1ee   :  { %vm1286_vm0 = vcmp.lt.s32.totalorder %v1284_v33, %v1285_v52  ;;  %vm1298_vm2 = vcmp.lt.s32.totalorder %v1295_v50, %v1040_v19  ;;  %vm936_vm11 = vcmp.eq.f32.partialorder %v3637_v20, %v2866_v51  ;;  %vm938_vm5 = vcmp.eq.f32.partialorder %v3639_v62, %v2866_v51  ;;  %v3652_v62 = vld [vmem:[#allocation79_spill] sm:$0xff] }
 0x1ef   :  { %v1287_v43 = vsel %vm1286_vm0, %v1284_v33, %v1285_v52  ;;  %v3632_v33 = vld [vmem:[#allocation35_spill] sm:$0xff]  ;;  %vm932_vm0 = vcmp.eq.f32.partialorder %v3635_v31, %v2866_v51  ;;  %v1299_v5 = vsel %vm1298_vm2, %v1295_v50, %v1040_v19  ;;  %v1046_v36 = vsel %vm918_vm6, %v3640_v53, 2147483647 }
 0x1f0   :  { %v1288_v49 = vrot.slane %v1287_v43, 2  ;;  %vm926_vm9 = vcmp.eq.f32.partialorder %v3632_v33, %v2866_v51  ;;  %v1436_v39 = vperm.slane %v2870_v22, 1  ;;  %v1050_v15 = vsel %vm922_vm10, %v2377_v12, 2147483647 }
 0x1f1   :  { %v1457_v22 = vperm.slane %v2883_v42, 1  ;;  %v1054_v12 = vsel %vm926_vm9, %v2383_v9, 2147483647  ;;  %vm1447_vm2 = vcmask 1040384   ;;  %vm940_vm9 = vcmp.eq.f32.partialorder %v3644_v54, %v2866_v51  ;;  %v3659_v54 = vld [vmem:[#allocation99_spill] sm:$0xff] }
 0x1f2   :  { %vm1289_vm7 = vcmp.lt.s32.totalorder %v1287_v43, %v1288_v49  ;;  %v1060_v33 = vsel %vm932_vm0, %v2392_v40, 2147483647  ;;  %v3648_v40 = vld [vmem:[#allocation62_spill] sm:$0xff] }
 0x1f3   :  { %v1290_v52 = vsel %vm1289_vm7, %v1287_v43, %v1288_v49  ;;  %v1042_v43 = vsel %vm914_vm12, %v2364_v61, 2147483647  ;;  %v3638_v49 = vld [vmem:[#allocation104_spill] sm:$0xff]  ;;  %v1048_v61 = vsel %vm920_vm8, %v2374_v29, 2147483647  ;;  %vm2974_vm8 = vcmp.lt.f32.partialorder %v2866_v51, %v1436_v39  ;;  %v3654_v39 = vld [vmem:[#allocation87_spill] sm:$0xff] }
 0x1f4   :  { %v1291_v35 = vrot.slane %v1290_v52, 1  ;;  %v1044_v37 = vsel %vm916_vm3, %v3638_v49, 2147483647  ;;  %vm1300_vm12 = vcmp.lt.s32.totalorder %v1297_v16, %v1042_v43  ;;  %vm944_vm0 = vcmp.eq.f32.partialorder %v3648_v40, %v2866_v51 }
 0x1f5   :  { %v1301_v38 = vsel %vm1300_vm12, %v1297_v16, %v1042_v43  ;;  %vm1302_vm7 = vcmp.lt.s32.totalorder %v1299_v5, %v1044_v37  ;;  %vm3645_vm12 = vcmp.eq.f32.partialorder %v3634_v32, %v2866_v51  ;;  %v3650_v43 = vld [vmem:[#allocation71_spill] sm:$0xff] }
 0x1f6   :  { %vm1292_vm13 = vcmp.lt.s32.totalorder %v1290_v52, %v1291_v35  ;;  %v1303_v19 = vsel %vm1302_vm7, %v1299_v5, %v1044_v37  ;;  %vm1304_vm3 = vcmp.lt.s32.totalorder %v1301_v38, %v1046_v36  ;;  %v1058_v9 = vsel %vm3645_vm12, %v2389_v8, 2147483647  ;;  %v3651_v37 = vld [vmem:[#allocation75_spill] sm:$0xff] }
 0x1f7   :  { %v1293_v34 = vsel %vm1292_vm13, %v1290_v52, %v1291_v35  ;;  %v1305_v49 = vsel %vm1304_vm3, %v1301_v38, %v1046_v36  ;;  %vm1306_vm6 = vcmp.lt.s32.totalorder %v1303_v19, %v1048_v61  ;;  %v1461_v36 = vsel %vm2974_vm8, %v2866_v51, %v1457_v22  ;;  %v3646_v52 = vld [vmem:[#allocation59_spill] sm:$0xff]  ;;  %v3649_v35 = vld [vmem:[#allocation66_spill] sm:$0xff] }
 0x1f8   :  { %v2967_v50 = vsel %vm2902_vm15, %v1293_v34, %v1442_v57  ;;  %v1052_v57 = vsel %vm924_vm14, %v2380_v14, 2147483647  ;;  %v1307_v6 = vsel %vm1306_vm6, %v1303_v19, %v1048_v61  ;;  %vm1308_vm15 = vcmp.lt.s32.totalorder %v1305_v49, %v1050_v15  ;;  %v3653_v61 = vld [vmem:[#allocation83_spill] sm:$0xff] }
 0x1f9   :  { %v1309_v38 = vsel %vm1308_vm15, %v1305_v49, %v1050_v15  ;;  %vm1310_vm10 = vcmp.lt.s32.totalorder %v1307_v6, %v1052_v57  ;;  %vm3643_vm13 = vcmp.eq.f32.partialorder %v3633_v58, %v2866_v51  ;;  %v1464_v7 = vrot.slane %v1461_v36, 7 }
 0x1fa   :  { %v1056_v42 = vsel %vm3643_vm13, %v2386_v48, 2147483647  ;;  %v1311_v14 = vsel %vm1310_vm10, %v1307_v6, %v1052_v57  ;;  %vm1312_vm14 = vcmp.lt.s32.totalorder %v1309_v38, %v1054_v12  ;;  %vm942_vm6 = vcmp.eq.f32.partialorder %v3646_v52, %v2866_v51  ;;  %v3655_v57 = vld [vmem:[#allocation89_spill] sm:$0xff]  ;;  %v3656_v6 = vld [vmem:[#allocation58_spill] sm:$0xff] }
 0x1fb   :  { %v1313_v41 = vsel %vm1312_vm14, %v1309_v38, %v1054_v12  ;;  %vm1314_vm7 = vcmp.lt.s32.totalorder %v1311_v14, %v1056_v42  ;;  %v1465_v48 = vsel %vm1447_vm2, %v2911_v30, %v1464_v7  ;;  %v1062_v8 = vsel %vm934_vm4, %v2395_v60, 2147483647 }
 0x1fc   :  { %v1315_v58 = vsel %vm1314_vm7, %v1311_v14, %v1056_v42  ;;  %vm1316_vm3 = vcmp.lt.s32.totalorder %v1313_v41, %v1058_v9  ;;  %1467 = vst.msk [vmem:[#allocation2] sm:$0x3] %vm2227_vm1, %v1465_v48  ;;  %v1064_v30 = vsel %vm936_vm11, %v2400_v47, 2147483647  ;;  %vm946_vm13 = vcmp.eq.f32.partialorder %v3649_v35, %v2866_v51  ;;  %v3657_v42 = vld [vmem:[#allocation97_spill] sm:$0xff]  ;;  %v3658_v14 = vld [vmem:[#allocation115_spill] sm:$0xff] }
 0x1fd   :  { %v1317_v32 = vsel %vm1316_vm3, %v1313_v41, %v1058_v9  ;;  %vm1318_vm15 = vcmp.lt.s32.totalorder %v1315_v58, %v1060_v33  ;;  %v1066_v60 = vsel %vm938_vm5, %v2403_v46, 2147483647  ;;  %vm948_vm14 = vcmp.eq.f32.partialorder %v3650_v43, %v2866_v51  ;;  %v3660_v9 = vld [vmem:[#allocation116_spill] sm:$0xff]  ;;  %v3662_v48 = vld [vmem:[#allocation10_spill] sm:$0xff] }
 0x1fe   :  { %v1319_v31 = vsel %vm1318_vm15, %v1315_v58, %v1060_v33  ;;  %vm1320_vm10 = vcmp.lt.s32.totalorder %v1317_v32, %v1062_v8  ;;  %v1068_v47 = vsel %vm940_vm9, %v2406_v2, 2147483647  ;;  %vm950_vm12 = vcmp.eq.f32.partialorder %v3651_v37, %v2866_v51  ;;  %v3661_v58 = vld [vmem:[#allocation7_spill] sm:$0xff] }
 0x1ff   :  { %v1321_v11 = vsel %vm1320_vm10, %v1317_v32, %v1062_v8  ;;  %vm1322_vm4 = vcmp.lt.s32.totalorder %v1319_v31, %v1064_v30  ;;  %v1070_v46 = vsel %vm942_vm6, %v3556_v63, 2147483647  ;;  %vm952_vm7 = vcmp.eq.f32.partialorder %v3652_v62, %v2866_v51  ;;  %v3663_v32 = vld [vmem:[#allocation13_spill] sm:$0xff] }
 0x200   :  { %v1323_v20 = vsel %vm1322_vm4, %v1319_v31, %v1064_v30  ;;  %vm1324_vm11 = vcmp.lt.s32.totalorder %v1321_v11, %v1066_v60  ;;  %v1072_v2 = vsel %vm944_vm0, %v3559_v17, 2147483647  ;;  %vm954_vm3 = vcmp.eq.f32.partialorder %v3653_v61, %v2866_v51  ;;  %v3664_v31 = vld [vmem:[#allocation16_spill] sm:$0xff] }
 0x201   :  { %v1325_v5 = vsel %vm1324_vm11, %v1321_v11, %v1066_v60  ;;  %vm1326_vm5 = vcmp.lt.s32.totalorder %v1323_v20, %v1068_v47  ;;  %v1074_v63 = vsel %vm946_vm13, %v3560_v18, 2147483647  ;;  %vm956_vm15 = vcmp.eq.f32.partialorder %v3654_v39, %v2866_v51  ;;  %v3666_v11 = vld [vmem:[#allocation118_spill] sm:$0xff] }
 0x202   :  { %v1327_v53 = vsel %vm1326_vm5, %v1323_v20, %v1068_v47  ;;  %vm1328_vm9 = vcmp.lt.s32.totalorder %v1325_v5, %v1070_v46  ;;  %v1076_v17 = vsel %vm948_vm14, %v3563_v23, 2147483647  ;;  %v1078_v49 = vsel %vm950_vm12, %v3564_v4, 2147483647  ;;  %v3667_v20 = vld [vmem:[#allocation22_spill] sm:$0xff] }
 0x203   :  { %v1329_v34 = vsel %vm1328_vm9, %v1325_v5, %v1070_v46  ;;  %vm1330_vm6 = vcmp.lt.s32.totalorder %v1327_v53, %v1072_v2  ;;  %v1471_v19 = vld [vmem:[#allocation2] sm:$0x3]  ;;  %vm958_vm13 = vcmp.eq.f32.partialorder %v3655_v57, %v2866_v51  ;;  %v1080_v12 = vsel %vm952_vm7, %v3567_v28, 2147483647  ;;  %v3669_v46 = vld [vmem:[#allocation25_spill] sm:$0xff]  ;;  %v3674_v39 = vld [vmem:[#allocation122_spill] sm:$0xff] }
 0x204   :  { %v1331_v15 = vsel %vm1330_vm6, %v1327_v53, %v1072_v2  ;;  %vm1332_vm0 = vcmp.lt.s32.totalorder %v1329_v34, %v1074_v63  ;;  %v1472_v18 = vmax.f32 %v1471_v19, 0.0  ;;  %vm960_vm14 = vcmp.eq.f32.partialorder %v3656_v6, %v2866_v51  ;;  %v3671_v2 = vld [vmem:[#allocation28_spill] sm:$0xff]  ;;  %v3672_v53 = vld [vmem:[#allocation121_spill] sm:$0xff]  ;;  %v3675_v19 = vld [vmem:[#allocation34_spill] sm:$0xff] }
 0x205   :  { %v1333_v22 = vsel %vm1332_vm0, %v1329_v34, %v1074_v63  ;;  %vm1334_vm10 = vcmp.lt.s32.totalorder %v1331_v15, %v1076_v17  ;;  %v1082_v4 = vsel %vm954_vm3, %v3568_v25, 2147483647  ;;  %v1084_v28 = vsel %vm956_vm15, %v3571_v44, 2147483647  ;;  %v3673_v34 = vld [vmem:[#allocation31_spill] sm:$0xff]  ;;  %v3677_v57 = vld [vmem:[#allocation124_spill] sm:$0xff] }
 0x206   :  { %v1335_v23 = vsel %vm1334_vm10, %v1331_v15, %v1076_v17  ;;  %vm1336_vm4 = vcmp.lt.s32.totalorder %v1333_v22, %v1078_v49  ;;  %1473 = vst.msk [vmem:[%s3201_s2] sm:$0x3] %vm2227_vm1, %v1472_v18  ;;  %vm964_vm5 = vcmp.eq.f32.partialorder %v3657_v42, %v2866_v51  ;;  %v1086_v25 = vsel %vm958_vm13, %v3658_v14, 2147483647  ;;  %v3676_v18 = vld [vmem:[#allocation37_spill] sm:$0xff]  ;;  %v3678_v6 = vld [vmem:[#allocation40_spill] sm:$0xff] }
 0x207   :  { %v1337_v38 = vsel %vm1336_vm4, %v1333_v22, %v1078_v49  ;;  %vm1338_vm11 = vcmp.lt.s32.totalorder %v1335_v23, %v1080_v12  ;;  %vm966_vm9 = vcmp.eq.f32.partialorder %v3659_v54, %v2866_v51  ;;  %v1088_v41 = vsel %vm960_vm14, %v3660_v9, 2147483647 }
 0x208   :  { %v1339_v36 = vsel %vm1338_vm11, %v1335_v23, %v1080_v12  ;;  %vm1340_vm12 = vcmp.lt.s32.totalorder %v1337_v38, %v1082_v4  ;;  %vm968_vm6 = vcmp.eq.f32.partialorder %v3661_v58, %v2866_v51  ;;  %vm970_vm0 = vcmp.eq.f32.partialorder %v3662_v48, %v2866_v51  ;;  %v3686_v48 = vld [vmem:[#allocation52_spill] sm:$0xff] }
 0x209   :  { %v1341_v7 = vsel %vm1340_vm12, %v1337_v38, %v1082_v4  ;;  %vm1342_vm7 = vcmp.lt.s32.totalorder %v1339_v36, %v1084_v28  ;;  %v1092_v52 = vsel %vm964_vm5, %v3578_v45, 2147483647  ;;  %vm972_vm13 = vcmp.eq.f32.partialorder %v3663_v32, %v2866_v51  ;;  %v3665_v45 = vld [vmem:[#allocation19_spill] sm:$0xff]  ;;  %v3679_v4 = vld [vmem:[#allocation125_spill] sm:$0xff] }
 0x20a   :  { %v1343_v33 = vsel %vm1342_vm7, %v1339_v36, %v1084_v28  ;;  %vm1344_vm3 = vcmp.lt.s32.totalorder %v1341_v7, %v1086_v25  ;;  %v1094_v40 = vsel %vm966_vm9, %v2448_v13, 2147483647  ;;  %vm974_vm14 = vcmp.eq.f32.partialorder %v3664_v31, %v2866_v51  ;;  %v3668_v13 = vld [vmem:[#allocation119_spill] sm:$0xff] }
 0x20b   :  { %v1345_v44 = vsel %vm1344_vm3, %v1341_v7, %v1086_v25  ;;  %vm1346_vm15 = vcmp.lt.s32.totalorder %v1343_v33, %v1088_v41  ;;  %v1096_v35 = vsel %vm968_vm6, %v2451_v26, 2147483647  ;;  %vm976_vm12 = vcmp.eq.f32.partialorder %v3665_v45, %v2866_v51  ;;  %v3670_v26 = vld [vmem:[#allocation120_spill] sm:$0xff]  ;;  %v3680_v36 = vld [vmem:[#allocation43_spill] sm:$0xff]  ;;  %v3682_v25 = vld [vmem:[#allocation46_spill] sm:$0xff] }
 0x20c   :  { %v1347_v8 = vsel %vm1346_vm15, %v1343_v33, %v1088_v41  ;;  %vm1348_vm10 = vcmp.lt.s32.totalorder %v1345_v44, %v2896_v24  ;;  %v1098_v43 = vsel %vm970_vm0, %v3666_v11, 2147483647  ;;  %vm978_vm7 = vcmp.eq.f32.partialorder %v3667_v20, %v2866_v51  ;;  %v3683_v7 = vld [vmem:[#allocation127_spill] sm:$0xff]  ;;  %v3684_v41 = vld [vmem:[#allocation49_spill] sm:$0xff]  ;;  %v3685_v33 = vld [vmem:[#allocation128_spill] sm:$0xff] }
 0x20d   :  { %v1349_v30 = vsel %vm1348_vm10, %v1345_v44, %v2896_v24  ;;  %vm1350_vm4 = vcmp.lt.s32.totalorder %v1347_v8, %v1092_v52  ;;  %v1100_v24 = vsel %vm972_vm13, %v3668_v13, 2147483647  ;;  %vm980_vm3 = vcmp.eq.f32.partialorder %v3669_v46, %v2866_v51  ;;  %v3690_v11 = vld [vmem:[#allocation64_spill] sm:$0xff] }
 0x20e   :  { %v1351_v60 = vsel %vm1350_vm4, %v1347_v8, %v1092_v52  ;;  %vm1352_vm11 = vcmp.lt.s32.totalorder %v1349_v30, %v1094_v40  ;;  %v1102_v5 = vsel %vm974_vm14, %v3670_v26, 2147483647  ;;  %vm982_vm15 = vcmp.eq.f32.partialorder %v3671_v2, %v2866_v51  ;;  %v3687_v52 = vld [vmem:[#allocation129_spill] sm:$0xff]  ;;  %v3692_v13 = vld [vmem:[#allocation68_spill] sm:$0xff]  ;;  %v3694_v26 = vld [vmem:[#allocation78_spill] sm:$0xff] }
 0x20f   :  { %v1353_v47 = vsel %vm1352_vm11, %v1349_v30, %v1094_v40  ;;  %vm1354_vm5 = vcmp.lt.s32.totalorder %v1351_v60, %v1096_v35  ;;  %v1104_v61 = vsel %vm976_vm12, %v3672_v53, 2147483647  ;;  %vm984_vm10 = vcmp.eq.f32.partialorder %v3673_v34, %v2866_v51  ;;  %v3688_v40 = vld [vmem:[#allocation55_spill] sm:$0xff]  ;;  %v3695_v2 = vld [vmem:[#allocation82_spill] sm:$0xff]  ;;  %v3697_v34 = vld [vmem:[#allocation88_spill] sm:$0xff] }
 0x210   :  { %v1355_v37 = vsel %vm1354_vm5, %v1351_v60, %v1096_v35  ;;  %vm1356_vm9 = vcmp.lt.s32.totalorder %v1353_v47, %v1098_v43  ;;  %v1106_v17 = vsel %vm978_vm7, %v3674_v39, 2147483647  ;;  %vm986_vm4 = vcmp.eq.f32.partialorder %v3675_v19, %v2866_v51  ;;  %v3689_v35 = vld [vmem:[#allocation61_spill] sm:$0xff] }
 0x211   :  { %v1357_v62 = vsel %vm1356_vm9, %v1353_v47, %v1098_v43  ;;  %vm1358_vm6 = vcmp.lt.s32.totalorder %v1355_v37, %v1100_v24  ;;  %v1108_v49 = vsel %vm980_vm3, %v3590_v10, 2147483647  ;;  %vm988_vm11 = vcmp.eq.f32.partialorder %v3676_v18, %v2866_v51  ;;  %v3681_v10 = vld [vmem:[#allocation126_spill] sm:$0xff]  ;;  %v3691_v43 = vld [vmem:[#allocation133_spill] sm:$0xff] }
 0x212   :  { %v1359_v63 = vsel %vm1358_vm6, %v1355_v37, %v1100_v24  ;;  %vm1360_vm0 = vcmp.lt.s32.totalorder %v1357_v62, %v1102_v5  ;;  %v1110_v12 = vsel %vm982_vm15, %v3677_v57, 2147483647  ;;  %vm990_vm5 = vcmp.eq.f32.partialorder %v3678_v6, %v2866_v51  ;;  %v3693_v37 = vld [vmem:[#allocation73_spill] sm:$0xff]  ;;  %v3702_v57 = vld [vmem:[#allocation96_spill] sm:$0xff]  ;;  %v3704_v6 = vld [vmem:[#allocation98_spill] sm:$0xff] }
 0x213   :  { %v1361_v15 = vsel %vm1360_vm0, %v1357_v62, %v1102_v5  ;;  %vm1362_vm13 = vcmp.lt.s32.totalorder %v1359_v63, %v1104_v61  ;;  %v1112_v38 = vsel %vm984_vm10, %v3679_v4, 2147483647  ;;  %vm992_vm9 = vcmp.eq.f32.partialorder %v3680_v36, %v2866_v51  ;;  %v3705_v4 = vld [vmem:[#allocation69_spill] sm:$0xff]  ;;  %v3706_v36 = vld [vmem:[#allocation100_spill] sm:$0xff] }
 0x214   :  { %v1363_v22 = vsel %vm1362_vm13, %v1359_v63, %v1104_v61  ;;  %vm1364_vm14 = vcmp.lt.s32.totalorder %v1361_v15, %v1106_v17  ;;  %v1114_v42 = vsel %vm986_vm4, %v3681_v10, 2147483647  ;;  %vm994_vm6 = vcmp.eq.f32.partialorder %v3682_v25, %v2866_v51  ;;  %v3696_v61 = vld [vmem:[#allocation86_spill] sm:$0xff]  ;;  %v3707_v10 = vld [vmem:[#allocation135_spill] sm:$0xff] }
 0x215   :  { %v1365_v23 = vsel %vm1364_vm14, %v1361_v15, %v1106_v17  ;;  %vm1366_vm12 = vcmp.lt.s32.totalorder %v1363_v22, %v1108_v49  ;;  %v1116_v54 = vsel %vm988_vm11, %v3683_v7, 2147483647  ;;  %vm996_vm0 = vcmp.eq.f32.partialorder %v3684_v41, %v2866_v51  ;;  %v3698_v17 = vld [vmem:[#allocation91_spill] sm:$0xff]  ;;  %v3708_v25 = vld [vmem:[#allocation106_spill] sm:$0xff]  ;;  %v3709_v7 = vld [vmem:[#allocation136_spill] sm:$0xff] }
 0x216   :  { %v1367_v28 = vsel %vm1366_vm12, %v1363_v22, %v1108_v49  ;;  %vm1368_vm7 = vcmp.lt.s32.totalorder %v1365_v23, %v1110_v12  ;;  %v1118_v58 = vsel %vm990_vm5, %v3685_v33, 2147483647  ;;  %vm998_vm13 = vcmp.eq.f32.partialorder %v3686_v48, %v2866_v51  ;;  %v3700_v49 = vld [vmem:[#allocation93_spill] sm:$0xff]  ;;  %v3710_v41 = vld [vmem:[#allocation131_spill] sm:$0xff]  ;;  %v3712_v48 = vld [vmem:[#allocation138_spill] sm:$0xff] }
 0x217   :  { %v1369_v14 = vsel %vm1368_vm7, %v1365_v23, %v1110_v12  ;;  %vm1370_vm3 = vcmp.lt.s32.totalorder %v1367_v28, %v1112_v38  ;;  %v1120_v8 = vsel %vm992_vm9, %v3687_v52, 2147483647  ;;  %vm1000_vm14 = vcmp.eq.f32.partialorder %v3688_v40, %v2866_v51  ;;  %v3711_v33 = vld [vmem:[#allocation137_spill] sm:$0xff] }
 0x218   :  { %v1371_v9 = vsel %vm1370_vm3, %v1367_v28, %v1112_v38  ;;  %vm1372_vm15 = vcmp.lt.s32.totalorder %v1369_v14, %v1114_v42  ;;  %v1122_v30 = vsel %vm994_vm6, %v3602_v1, 2147483647  ;;  %vm1002_vm12 = vcmp.eq.f32.partialorder %v3689_v35, %v2866_v51 }
 0x219   :  { %v1373_v44 = vsel %vm1372_vm15, %v1369_v14, %v1114_v42  ;;  %vm1374_vm10 = vcmp.lt.s32.totalorder %v1371_v9, %v1116_v54  ;;  %v1124_v60 = vsel %vm996_vm0, %v3605_v3, 2147483647  ;;  %vm1004_vm7 = vcmp.eq.f32.partialorder %v3690_v11, %v2866_v51 }
 0x21a   :  { %v1375_v32 = vsel %vm1374_vm10, %v1371_v9, %v1116_v54  ;;  %vm1376_vm4 = vcmp.lt.s32.totalorder %v1373_v44, %v1118_v58  ;;  %v1126_v47 = vsel %vm998_vm13, %v3691_v43, 2147483647  ;;  %vm1006_vm3 = vcmp.eq.f32.partialorder %v3692_v13, %v2866_v51 }
 0x21b   :  { %v1377_v31 = vsel %vm1376_vm4, %v1373_v44, %v1118_v58  ;;  %vm1378_vm11 = vcmp.lt.s32.totalorder %v1375_v32, %v1120_v8  ;;  %v1128_v1 = vsel %vm1000_vm14, %v2517_v21, 2147483647  ;;  %vm1008_vm15 = vcmp.eq.f32.partialorder %v3693_v37, %v2866_v51 }
 0x21c   :  { %v1379_v45 = vsel %vm1378_vm11, %v1375_v32, %v1120_v8  ;;  %vm1380_vm5 = vcmp.lt.s32.totalorder %v1377_v31, %v1122_v30  ;;  %v1130_v3 = vsel %vm1002_vm12, %v2520_v27, 2147483647  ;;  %vm1010_vm10 = vcmp.eq.f32.partialorder %v3694_v26, %v2866_v51  ;;  %v3713_v32 = vld [vmem:[#allocation139_spill] sm:$0xff] }
 0x21d   :  { %v1381_v20 = vsel %vm1380_vm5, %v1377_v31, %v1122_v30  ;;  %vm1382_vm9 = vcmp.lt.s32.totalorder %v1379_v45, %v1124_v60  ;;  %v1132_v5 = vsel %vm1004_vm7, %v2523_v56, 2147483647  ;;  %vm1012_vm4 = vcmp.eq.f32.partialorder %v3695_v2, %v2866_v51  ;;  %v3714_v31 = vld [vmem:[#allocation140_spill] sm:$0xff] }
 0x21e   :  { %v1383_v24 = vsel %vm1382_vm9, %v1379_v45, %v1124_v60  ;;  %vm1384_vm6 = vcmp.lt.s32.totalorder %v1381_v20, %v1126_v47  ;;  %v1134_v21 = vsel %vm1006_vm3, %v2528_v0, 2147483647  ;;  %vm1014_vm11 = vcmp.eq.f32.partialorder %v3696_v61, %v2866_v51  ;;  %v3699_v0 = vld [vmem:[#allocation134_spill] sm:$0xff] }
 0x21f   :  { %v1385_v46 = vsel %vm1384_vm6, %v1381_v20, %v1126_v47  ;;  %vm1386_vm0 = vcmp.lt.s32.totalorder %v1383_v24, %v1128_v1  ;;  %v1136_v27 = vsel %vm1008_vm15, %v2533_v59, 2147483647  ;;  %vm1016_vm5 = vcmp.eq.f32.partialorder %v3697_v34, %v2866_v51  ;;  %v3701_v59 = vld [vmem:[#allocation65_spill] sm:$0xff] }
 0x220   :  { %v1387_v62 = vsel %vm1386_vm0, %v1383_v24, %v1128_v1  ;;  %vm1388_vm13 = vcmp.lt.s32.totalorder %v1385_v46, %v1130_v3  ;;  %v1138_v56 = vsel %vm1010_vm10, %v2545_v55, 2147483647  ;;  %vm1018_vm9 = vcmp.eq.f32.partialorder %v3698_v17, %v2866_v51  ;;  %v3703_v55 = vld [vmem:[#allocation107_spill] sm:$0xff]  ;;  %v3715_v24 = vld [vmem:[#allocation72_spill] sm:$0xff] }
 0x221   :  { %v1389_v53 = vsel %vm1388_vm13, %v1385_v46, %v1130_v3  ;;  %vm1390_vm14 = vcmp.lt.s32.totalorder %v1387_v62, %v1132_v5  ;;  %v1140_v15 = vsel %vm1012_vm4, %v3699_v0, 2147483647  ;;  %vm1020_vm6 = vcmp.eq.f32.partialorder %v3700_v49, %v2866_v51 }
 0x222   :  { %v1391_v63 = vsel %vm1390_vm14, %v1387_v62, %v1132_v5  ;;  %vm1392_vm12 = vcmp.lt.s32.totalorder %v1389_v53, %v1134_v21  ;;  %v1142_v22 = vsel %vm1014_vm11, %v3701_v59, 2147483647  ;;  %vm1022_vm0 = vcmp.eq.f32.partialorder %v3702_v57, %v2866_v51 }
 0x223   :  { %v1393_v39 = vsel %vm1392_vm12, %v1389_v53, %v1134_v21  ;;  %vm1394_vm7 = vcmp.lt.s32.totalorder %v1391_v63, %v1136_v27  ;;  %v1144_v12 = vsel %vm1016_vm5, %v3703_v55, 2147483647  ;;  %vm1024_vm13 = vcmp.eq.f32.partialorder %v3704_v6, %v2866_v51 }
 0x224   :  { %v1395_v19 = vsel %vm1394_vm7, %v1391_v63, %v1136_v27  ;;  %vm1396_vm3 = vcmp.lt.s32.totalorder %v1393_v39, %v1138_v56  ;;  %v1146_v38 = vsel %vm1018_vm9, %v3705_v4, 2147483647  ;;  %vm1026_vm14 = vcmp.eq.f32.partialorder %v3706_v36, %v2866_v51 }
 0x225   :  { %v1397_v18 = vsel %vm1396_vm3, %v1393_v39, %v1138_v56  ;;  %vm1398_vm15 = vcmp.lt.s32.totalorder %v1395_v19, %v1140_v15  ;;  %v1148_v42 = vsel %vm1020_vm6, %v3707_v10, 2147483647  ;;  %vm1028_vm12 = vcmp.eq.f32.partialorder %v3708_v25, %v2866_v51 }
 0x226   :  { %v1399_v23 = vsel %vm1398_vm15, %v1395_v19, %v1140_v15  ;;  %vm1400_vm10 = vcmp.lt.s32.totalorder %v1397_v18, %v1142_v22  ;;  %v1150_v54 = vsel %vm1022_vm0, %v3709_v7, 2147483647  ;;  %vm1030_vm7 = vcmp.eq.f32.partialorder %v3710_v41, %v2866_v51 }
 0x227   :  { %v1401_v28 = vsel %vm1400_vm10, %v1397_v18, %v1142_v22  ;;  %vm1402_vm4 = vcmp.lt.s32.totalorder %v1399_v23, %v1144_v12  ;;  %v1152_v58 = vsel %vm1024_vm13, %v3711_v33, 2147483647  ;;  %v1154_v52 = vsel %vm1026_vm14, %v3712_v48, 2147483647 }
 0x228   :  { %v1403_v14 = vsel %vm1402_vm4, %v1399_v23, %v1144_v12  ;;  %vm1404_vm11 = vcmp.lt.s32.totalorder %v1401_v28, %v1146_v38  ;;  %v1156_v40 = vsel %vm1028_vm12, %v3713_v32, 2147483647  ;;  %v1158_v35 = vsel %vm1030_vm7, %v3714_v31, 2147483647 }
 0x229   :  { %v1405_v9 = vsel %vm1404_vm11, %v1401_v28, %v1146_v38  ;;  %vm1406_vm5 = vcmp.lt.s32.totalorder %v1403_v14, %v1148_v42  ;;  %v1443_v37 = vperm.slane %v3715_v24, 1 }
 0x22a   :  { %v1407_v44 = vsel %vm1406_vm5, %v1403_v14, %v1148_v42  ;;  %vm1408_vm9 = vcmp.lt.s32.totalorder %v1405_v9, %v1150_v54 }
 0x22b   :  { %v1409_v8 = vsel %vm1408_vm9, %v1405_v9, %v1150_v54  ;;  %vm1410_vm3 = vcmp.lt.s32.totalorder %v1407_v44, %v1152_v58 }
 0x22c   :  { %v1411_v30 = vsel %vm1410_vm3, %v1407_v44, %v1152_v58  ;;  %vm1412_vm6 = vcmp.lt.s32.totalorder %v1409_v8, %v1154_v52 }
 0x22d   :  { %v1413_v60 = vsel %vm1412_vm6, %v1409_v8, %v1154_v52  ;;  %vm1414_vm15 = vcmp.lt.s32.totalorder %v1411_v30, %v1156_v40 }
 0x22e   :  { %v1415_v45 = vsel %vm1414_vm15, %v1411_v30, %v1156_v40  ;;  %vm1416_vm0 = vcmp.lt.s32.totalorder %v1413_v60, %v1158_v35 }
 0x22f   :  { %v1417_v11 = vsel %vm1416_vm0, %v1413_v60, %v1158_v35 }
 0x230   :  { %vm1418_vm10 = vcmp.lt.s32.totalorder %v1415_v45, %v1417_v11 }
 0x231   :  { %v1419_v51 = vsel %vm1418_vm10, %v1415_v45, %v1417_v11 }
 0x232   :  { %v1420_v43 = vrot.slane %v1419_v51, 4 }
 0x234   :  { %vm1421_vm13 = vcmp.lt.s32.totalorder %v1419_v51, %v1420_v43 }
 0x235   :  { %v1422_v47 = vsel %vm1421_vm13, %v1419_v51, %v1420_v43 }
 0x236   :  { %v1423_v20 = vrot.slane %v1422_v47, 2 }
 0x238   :  { %vm1424_vm4 = vcmp.lt.s32.totalorder %v1422_v47, %v1423_v20 }
 0x239   :  { %v1425_v13 = vsel %vm1424_vm4, %v1422_v47, %v1423_v20 }
 0x23a   :  { %v1426_v1 = vrot.slane %v1425_v13, 1 }
 0x23c   :  { %vm1427_vm14 = vcmp.lt.s32.totalorder %v1425_v13, %v1426_v1 }
 0x23d   :  { %v1428_v3 = vsel %vm1427_vm14, %v1425_v13, %v1426_v1 }
 0x23e   :  { %v1445_v46 = vsel %vm2974_vm8, %v1428_v3, %v1443_v37 }
 0x23f   :  { %v1446_v26 = vrot.slane %v1445_v46, 7 }
 0x241   :  { %v1448_v5 = vsel %vm1447_vm2, %v2967_v50, %v1446_v26 }
 0x242   :  { %1453 = vst.msk [vmem:[#allocation3] sm:$0x3] %vm2227_vm1, %v1448_v5 }
 0x249   :  { %v1474_v62 = vld [vmem:[#allocation3] sm:$0x3] }
 0x24a   :  { %1475 = vst.msk [vmem:[%s3202_s3] sm:$0x3] %vm2227_vm1, %v1474_v62 }

</bundles_post_ra>
